<compile_context>
chip_gen: v6e
topology: v6e:2x2x1
jax: 0.10.0
libtpu: 0.0.40
codegen_flags: <defaults>
</compile_context>

<pallas_src>
import functools
import math

import jax
import jax.numpy as jnp
import numpy as np
from jax.experimental import pallas as pl
from jax.experimental.pallas import tpu as pltpu


# --------------------------------------------------------------------------- #
# Hardware-aware sizing helpers                                                #
# --------------------------------------------------------------------------- #
def _device_kind():
    try:
        return jax.devices()[0].device_kind.lower()
    except Exception:
        return ""


def _num_tensorcores_per_chip():
    # v7x has 2 TensorCores per chip; v5e/v6e have 1.
    return 2 if "v7" in _device_kind() else 1


def _vmem_capacity_bytes():
    try:
        return int(pltpu.get_tpu_info().vmem_capacity_bytes)
    except Exception:
        return 128 * 1024 * 1024


def _vmem_limit_bytes():
    cap = _vmem_capacity_bytes()
    budget = 48 * 1024 * 1024 if "v7" in _device_kind() else 100 * 1024 * 1024
    return int(min(budget, max(cap - 16 * 1024 * 1024, 16 * 1024 * 1024)))


def _gru_batch_chunks(Bn):
    # Split the batch across a leading "parallel" grid axis only on 2-TC chips
    # (v7x) and only when each half keeps >= 128 sublane-aligned MXU rows;
    # on v5e/v6e a 2-chunk grid would just serialize the recurrence.
    if _num_tensorcores_per_chip() < 2 or Bn % 2 != 0:
        return 1
    cb = Bn // 2
    if cb % 8 == 0 and cb >= 128:
        return 2
    return 1


def _gru_time_chunk(S, CB, H, override=None):
    """Time-chunk length for the GRU grid (divides S, fits a VMEM budget)."""
    if override is not None:
        tc = int(max(1, min(override, S)))
    else:
        # Residency per timestep: gx inputs 2 dirs x 2 bufs x 3H, outputs 2 x 2 x H (f32).
        per_t = 4 * CB * (2 * 2 * 3 * H + 2 * 2 * H)
        budget = _vmem_limit_bytes() // 2
        tc = int(max(1, min(S, budget // max(per_t, 1))))
    while S % tc != 0:
        tc -= 1
    return tc


def _attn_rows_per_step(Bn, S, Hh, budget):
    """Rows per attention grid step: fits VMEM budget and sublane alignment."""
    # bf16 inputs (2 halves x 2 bufs) + ~3 live f32 (S,S) tiles + 2-buf f32 attn out.
    per_row = 2 * 2 * S * Hh * 2 + 5 * S * S * 4 + 256
    cap = max(1, budget // per_row)
    if cap >= Bn:
        return Bn
    best = None
    for d in range(1, Bn + 1):
        if Bn % d == 0 and d <= cap and (d % 8 == 0 or d == Bn):
            best = d
    return best if best is not None else Bn


# --------------------------------------------------------------------------- #
# Kernel 1: fused bidirectional GRU recurrence (input projections hoisted)     #
# --------------------------------------------------------------------------- #
def _gru_layer_kernel(gxf_ref, gxb_ref, whh_ref, bhhn_ref,
                      outf_ref, outb_ref, h_ref, *, unroll):
    Tc = gxf_ref.shape[0]
    CB = h_ref.shape[0]
    H = outf_ref.shape[-1]

    # Hidden state [h_fwd | h_bwd] carried across the time-chunk grid axis.
    @pl.when(pl.program_id(1) == 0)
    def _():
        h_ref[...] = jnp.zeros_like(h_ref)

    # Hoisted: weight load + n-gate bias broadcast (JAX does not CSE
    # broadcast_in_dim across the unrolled recurrence).
    w_bd = whh_ref[...]                                    # (2H, 6H) block-diag
    bhhn = jnp.broadcast_to(bhhn_ref[...], (CB, 2 * H))    # [bhh_n_f | bhh_n_b]

    def step(i, carry):
        gxf = gxf_ref[i]                    # fwd gates at global time t0 + i
        gxb = gxb_ref[Tc - 1 - i]           # bwd gates at original time S-1-(t0+i)
        h_cat = h_ref[...]                  # (CB, 2H)

        # One MXU push per timestep for BOTH directions; column order of the
        # block-diagonal weight is [r_f z_f | r_b z_b | n_f n_b].
        gh = jnp.dot(h_cat, w_bd, preferred_element_type=jnp.float32)

        # r/z: one sigmoid per direction over a (CB, 2H) slice (recurrent r/z
        # bias already folded into gx outside the kernel).
        rz_f = jax.nn.sigmoid(gxf[:, :2 * H] + gh[:, :2 * H])
        rz_b = jax.nn.sigmoid(gxb[:, :2 * H] + gh[:, 2 * H:4 * H])

        gh_n = gh[:, 4 * H:] + bhhn         # n-gate recurrent term + bias, both dirs
        n_f = jnp.tanh(gxf[:, 2 * H:] + rz_f[:, :H] * gh_n[:, :H])
        n_b = jnp.tanh(gxb[:, 2 * H:] + rz_b[:, :H] * gh_n[:, H:])

        # h' = n + z * (h - n)
        hf_new = n_f + rz_f[:, H:] * (h_cat[:, :H] - n_f)
        hb_new = n_b + rz_b[:, H:] * (h_cat[:, H:] - n_b)

        h_ref[:, :H] = hf_new
        h_ref[:, H:] = hb_new
        outf_ref[i] = hf_new.astype(outf_ref.dtype)
        outb_ref[Tc - 1 - i] = hb_new.astype(outb_ref.dtype)
        return carry

    jax.lax.fori_loop(0, Tc, step, 0, unroll=unroll)


def _gate_bias(bih, bhh, H):
    # Fold the recurrent r/z bias into the (hoisted) input-side gate bias.
    # Legal because r/z add b_hh outside the r*(...) term; the n-gate bias must
    # stay inside the kernel.
    return bih + jnp.concatenate([bhh[:2 * H], jnp.zeros((H,), bhh.dtype)])


def _proj_layer0(x_sb, wih, bih, bhh, kmax_rows, H, E):
    """Layer-0 input projection in (S, Bn, 3H) order; keyword-max folded into a bias."""
    bf = jnp.bfloat16
    gx = jnp.einsum('sbe,ge->sbg', x_sb.astype(bf), wih[:, :E].astype(bf),
                    preferred_element_type=jnp.float32)
    kb = jnp.einsum('be,ge->bg', kmax_rows.astype(bf), wih[:, E:].astype(bf),
                    preferred_element_type=jnp.float32)
    return gx + (kb + _gate_bias(bih, bhh, H)[None, :])[None, :, :]


def _proj_hidden(xf, xb, wih, bih, bhh, H):
    """Deeper-layer projection on split fwd/bwd halves (avoids the concat HBM pass)."""
    bf = jnp.bfloat16
    gx = jnp.einsum('sbh,gh->sbg', xf.astype(bf), wih[:, :H].astype(bf),
                    preferred_element_type=jnp.float32)
    gx = gx + jnp.einsum('sbh,gh->sbg', xb.astype(bf), wih[:, H:].astype(bf),
                         preferred_element_type=jnp.float32)
    return gx + _gate_bias(bih, bhh, H)[None, None, :]


def gru_bidir_layer(gx_f, gx_b, whh_f, whh_b, bhh_f, bhh_b, time_chunk=None):
    """Bidirectional GRU recurrence. gx_*: (S, Bn, 3H) -> (out_f, out_b): (S, Bn, H)."""
    S, Bn, G = gx_f.shape
    H = G // 3

    # Block-diagonal recurrent weight; output column order [r_f z_f | r_b z_b | n_f n_b].
    wf_t = jnp.transpose(whh_f)                           # (H, 3H)
    wb_t = jnp.transpose(whh_b)
    z2 = jnp.zeros((H, 2 * H), wf_t.dtype)
    z1 = jnp.zeros((H, H), wf_t.dtype)
    w_bd = jnp.concatenate([
        jnp.concatenate([wf_t[:, :2 * H], z2, wf_t[:, 2 * H:], z1], axis=1),
        jnp.concatenate([z2, wb_t[:, :2 * H], z1, wb_t[:, 2 * H:]], axis=1),
    ], axis=0)                                            # (2H, 6H)
    bhh_n = jnp.concatenate([bhh_f[2 * H:], bhh_b[2 * H:]]).reshape(1, 2 * H)

    nb = _gru_batch_chunks(Bn)
    CB = Bn // nb
    Tc = _gru_time_chunk(S, CB, H, time_chunk)
    nt = S // Tc
    unroll = max(1, min(Tc, 8))
    kernel = functools.partial(_gru_layer_kernel, unroll=unroll)

    out_f, out_b = pl.pallas_call(
        kernel,
        out_shape=(jax.ShapeDtypeStruct((S, Bn, H), jnp.float32),
                   jax.ShapeDtypeStruct((S, Bn, H), jnp.float32)),
        grid=(nb, nt),
        in_specs=[
            pl.BlockSpec((Tc, CB, 3 * H), lambda b, t: (t, b, 0)),
            # Backward direction consumes time chunks from the end (reversed
            # index map) -> no flip of gx through HBM.
            pl.BlockSpec((Tc, CB, 3 * H), lambda b, t: (nt - 1 - t, b, 0)),
            pl.BlockSpec((2 * H, 6 * H), lambda b, t: (0, 0)),
            pl.BlockSpec((1, 2 * H), lambda b, t: (0, 0)),
        ],
        out_specs=[
            pl.BlockSpec((Tc, CB, H), lambda b, t: (t, b, 0)),
            pl.BlockSpec((Tc, CB, H), lambda b, t: (nt - 1 - t, b, 0)),
        ],
        scratch_shapes=[pltpu.VMEM((CB, 2 * H), jnp.float32)],
        compiler_params=pltpu.CompilerParams(
            dimension_semantics=("parallel", "arbitrary"),
            vmem_limit_bytes=_vmem_limit_bytes()),
    )(gx_f, gx_b, w_bd, bhh_n)
    return out_f, out_b


# --------------------------------------------------------------------------- #
# Kernel 2: BertSingleAttention (self, scaled dot-product) + sum over queries  #
# --------------------------------------------------------------------------- #
def _attn_kernel(xf_ref, xb_ref, vals_ref, attn_ref):
    Hh = xf_ref.shape[-1]
    xf = xf_ref[...]                                      # (TB, S, Hh) bf16
    xb = xb_ref[...]
    scale = 1.0 / math.sqrt(2 * Hh)

    # Scores on the concatenated feature dim without concatenating: scale folded
    # into one operand; bf16 inputs, f32 accumulation.
    scores = jnp.einsum('bqd,bkd->bqk', xf * scale, xf,
                        preferred_element_type=jnp.float32)
    scores = scores + jnp.einsum('bqd,bkd->bqk', xb * scale, xb,
                                 preferred_element_type=jnp.float32)
    m = jnp.max(scores, axis=-1, keepdims=True)
    e = jnp.exp(scores - m)
    p = e * pl.reciprocal(jnp.sum(e, axis=-1, keepdims=True), approx=True)
    # TODO(synk): attention-prob dropout skipped (eval-mode identity).
    attn_ref[...] = p

    # sum_q (P @ X) == (sum_q P) weighted sum of rows of X: VPU broadcast-mul +
    # k-reduction instead of a degenerate M=1 batched matmul.
    w = jnp.sum(p, axis=1)                                # (TB, S)
    vf = jnp.sum(w[:, :, None] * xf.astype(jnp.float32), axis=1)   # (TB, Hh)
    vb = jnp.sum(w[:, :, None] * xb.astype(jnp.float32), axis=1)
    vals_ref[:, :Hh] = vf.astype(vals_ref.dtype)
    vals_ref[:, Hh:] = vb.astype(vals_ref.dtype)


def single_attention_sum(xf, xb):
    """xf/xb: (Bn, S, H) halves of the GRU output. Returns ((Bn, 2H), (Bn, S, S))."""
    Bn, S, Hh = xf.shape
    TB = _attn_rows_per_step(Bn, S, Hh, _vmem_limit_bytes() // 2)
    nsteps = Bn // TB
    return pl.pallas_call(
        _attn_kernel,
        out_shape=(jax.ShapeDtypeStruct((Bn, 2 * Hh), jnp.float32),
                   jax.ShapeDtypeStruct((Bn, S, S), jnp.float32)),
        grid=(nsteps,),
        in_specs=[pl.BlockSpec((TB, S, Hh), lambda c: (c, 0, 0)),
                  pl.BlockSpec((TB, S, Hh), lambda c: (c, 0, 0))],
        out_specs=(pl.BlockSpec((TB, 2 * Hh), lambda c: (c, 0)),
                   pl.BlockSpec((TB, S, S), lambda c: (c, 0, 0))),
        compiler_params=pltpu.CompilerParams(
            dimension_semantics=("parallel",),
            vmem_limit_bytes=_vmem_limit_bytes()),
    )(xf, xb)


# --------------------------------------------------------------------------- #
# Full forward                                                                 #
# --------------------------------------------------------------------------- #
def word_attention_v2_forward(sentences, keywords, gru_params,
                              batch_size, sequence_length, rnn_size,
                              time_chunk=None):
    B, N, S, E = sentences.shape
    Bn = B * N
    H = rnn_size

    # Single layout permute at the start: time-major (S, Bn, E).
    x_sb = jnp.transpose(sentences.reshape(Bn, S, E), (1, 0, 2))

    # Keyword max over the sequence; folded into the layer-0 GRU bias per row
    # (equivalent to cat(sentences, max_k) @ Wih.T without materializing it).
    kmax = jnp.max(keywords, axis=1)                      # (B, E)
    kmax_rows = jnp.repeat(kmax, N, axis=0)               # (Bn, E)

    xf = xb = None
    for layer_idx, (p_fwd, p_bwd) in enumerate(gru_params):
        wih_f, whh_f, bih_f, bhh_f = p_fwd
        wih_b, whh_b, bih_b, bhh_b = p_bwd
        if layer_idx == 0:
            gx_f = _proj_layer0(x_sb, wih_f, bih_f, bhh_f, kmax_rows, H, E)
            gx_b = _proj_layer0(x_sb, wih_b, bih_b, bhh_b, kmax_rows, H, E)
        else:
            gx_f = _proj_hidden(xf, xb, wih_f, bih_f, bhh_f, H)
            gx_b = _proj_hidden(xf, xb, wih_b, bih_b, bhh_b, H)
        xf, xb = gru_bidir_layer(gx_f, gx_b, whh_f, whh_b, bhh_f, bhh_b,
                                 time_chunk=time_chunk)
        # TODO(synk): inter-layer GRU dropout skipped (eval-mode identity).

    # One permute per half before attention; bf16 operands for the MXU.
    xf_att = jnp.transpose(xf, (1, 0, 2)).astype(jnp.bfloat16)
    xb_att = jnp.transpose(xb, (1, 0, 2)).astype(jnp.bfloat16)
    vals, word_attn = single_attention_sum(xf_att, xb_att)   # (Bn,2H), (Bn,S,S)
    values = vals.reshape(batch_size, -1, 2 * rnn_size)
    return values, word_attn


# --------------------------------------------------------------------------- #
# Pure-JAX reference (mirrors the PyTorch module, for correctness check)       #
# --------------------------------------------------------------------------- #
def _ref_gru_dir(x_seq, wih, whh, bih, bhh):
    H = whh.shape[1]

    def step(h, xt):
        gx = xt @ wih.T + bih
        gh = h @ whh.T + bhh
        r = jax.nn.sigmoid(gx[:, :H] + gh[:, :H])
        z = jax.nn.sigmoid(gx[:, H:2 * H] + gh[:, H:2 * H])
        n = jnp.tanh(gx[:, 2 * H:] + r * gh[:, 2 * H:])
        h_new = (1.0 - z) * n + z * h
        return h_new, h_new

    h0 = jnp.zeros((x_seq.shape[0], H), jnp.float32)
    _, hs = jax.lax.scan(step, h0, jnp.transpose(x_seq, (1, 0, 2)))
    return jnp.transpose(hs, (1, 0, 2))


def _ref_forward(sentences, keywords, gru_params, batch_size, sequence_length, rnn_size):
    B, N, S, E = sentences.shape
    kmax = jnp.max(keywords, axis=1)
    kmax = jnp.broadcast_to(kmax[:, None, None, :], sentences.shape)
    s_k = jnp.concatenate([sentences, kmax], axis=-1)
    x = s_k.reshape(-1, sequence_length, 2 * E)
    for layer_params in gru_params:
        f = _ref_gru_dir(x, *layer_params[0])
        b = jnp.flip(_ref_gru_dir(jnp.flip(x, axis=1), *layer_params[1]), axis=1)
        x = jnp.concatenate([f, b], axis=-1)
    d = x.shape[-1]
    scores = jnp.einsum('bqd,bkd->bqk', x, x) / math.sqrt(d)
    attn = jax.nn.softmax(scores, axis=-1)
    vals = jnp.einsum('bqk,bkd->bqd', attn, x)
    values = vals.sum(axis=1).reshape(batch_size, -1, 2 * rnn_size)
    return values, attn


# --------------------------------------------------------------------------- #
def init_gru_params(key, embedding_dim, rnn_size, rnn_layers):
    params = []
    bound = 1.0 / math.sqrt(rnn_size)
    for layer in range(rnn_layers):
        din = 2 * embedding_dim if layer == 0 else 2 * rnn_size
        layer_params = []
        for _direction in range(2):
            key, k1, k2, k3, k4 = jax.random.split(key, 5)
            wih = jax.random.uniform(k1, (3 * rnn_size, din), jnp.float32, -bound, bound)
            whh = jax.random.uniform(k2, (3 * rnn_size, rnn_size), jnp.float32, -bound, bound)
            bih = jax.random.uniform(k3, (3 * rnn_size,), jnp.float32, -bound, bound)
            bhh = jax.random.uniform(k4, (3 * rnn_size,), jnp.float32, -bound, bound)
            layer_params.append((wih, whh, bih, bhh))
        params.append(layer_params)
    return params


if __name__ == "__main__":
    # Small, shape-consistent configuration.
    batch_size = 2
    num_sents = 3
    sequence_length = 8
    embedding_dim = 16
    rnn_size = 16
    rnn_layers = 2

    key = jax.random.PRNGKey(0)
    k_sent, k_kw, k_par = jax.random.split(key, 3)
    sentences = jax.random.normal(
        k_sent, (batch_size, num_sents, sequence_length, embedding_dim), jnp.float32)
    keywords = jax.random.normal(
        k_kw, (batch_size, sequence_length, embedding_dim), jnp.float32)
    gru_params = init_gru_params(k_par, embedding_dim, rnn_size, rnn_layers)

    ref_values, ref_attn = _ref_forward(
        sentences, keywords, gru_params, batch_size, sequence_length, rnn_size)

    # Run twice: default sizing (full-S time block) and an explicitly small time
    # chunk, to exercise the carried-hidden-state / reversed-chunk grid path.
    for tc in (None, 2):
        fwd = jax.jit(functools.partial(
            word_attention_v2_forward,
            batch_size=batch_size, sequence_length=sequence_length,
            rnn_size=rnn_size, time_chunk=tc))
        values, word_attn = fwd(sentences, keywords, gru_params)
        values = jax.block_until_ready(values)
        word_attn = jax.block_until_ready(word_attn)

        assert values.shape == (batch_size, num_sents, 2 * rnn_size)
        assert word_attn.shape == (batch_size * num_sents, sequence_length, sequence_length)
        np.testing.assert_allclose(np.asarray(values), np.asarray(ref_values),
                                   rtol=2e-2, atol=2e-2)
        np.testing.assert_allclose(np.asarray(word_attn), np.asarray(ref_attn),
                                   rtol=2e-2, atol=2e-2)

    print("KERNEL_OK")
</pallas_src>

<mosaic_0001>
module attributes {stable_mosaic.version = 11 : i64} {
  func.func @_attn_kernel(%arg0: i32, %arg1: memref<6x8x16xbf16, #tpu.memory_space<vmem>>, %arg2: memref<6x8x16xbf16, #tpu.memory_space<vmem>>, %arg3: memref<6x32xf32, #tpu.memory_space<vmem>>, %arg4: memref<6x8x8xf32, #tpu.memory_space<vmem>>) attributes {dimension_semantics = [#tpu.dimension_semantics<parallel>], iteration_bounds = array<i64: 1>, scalar_prefetch = 0 : i64, scratch_operands = 0 : i64, tpu.core_type = #tpu.core_type<tc>, window_params = [{transform_indices = @transform_0, window_bounds = array<i64: 6, 8, 16>}, {transform_indices = @transform_1, window_bounds = array<i64: 6, 8, 16>}, {transform_indices = @transform_2, window_bounds = array<i64: 6, 32>}, {transform_indices = @transform_3, window_bounds = array<i64: 6, 8, 8>}]} {
    %c0 = arith.constant 0 : index
    %c0_0 = arith.constant 0 : index
    %c0_1 = arith.constant 0 : index
    %0 = vector.load %arg1[%c0, %c0_0, %c0_1] : memref<6x8x16xbf16, #tpu.memory_space<vmem>>, vector<6x8x16xbf16>
    %c0_2 = arith.constant 0 : index
    %c0_3 = arith.constant 0 : index
    %c0_4 = arith.constant 0 : index
    %1 = vector.load %arg2[%c0_2, %c0_3, %c0_4] : memref<6x8x16xbf16, #tpu.memory_space<vmem>>, vector<6x8x16xbf16>
    %cst = arith.constant 1.767580e-01 : bf16
    %2 = vector.broadcast %cst : bf16 to vector<6x8x16xbf16>
    %3 = arith.mulf %0, %2 : vector<6x8x16xbf16>
    "tpu.trace_start"() <{level = 10 : i32, message = "bqd,bkd->bqk"}> : () -> ()
    %cst_5 = arith.constant dense<0.000000e+00> : vector<6x8x8xf32>
    %4 = tpu.matmul %3, %0, %cst_5 {dimension_numbers = #tpu.dot_dimension_numbers<[2], [2], [1], [1], [0, 0, 0, 1, 1, 1], [0], [0]>} : vector<6x8x16xbf16>, vector<6x8x16xbf16>, vector<6x8x8xf32> -> vector<6x8x8xf32>
    "tpu.trace_stop"() : () -> ()
    %cst_6 = arith.constant 1.767580e-01 : bf16
    %5 = vector.broadcast %cst_6 : bf16 to vector<6x8x16xbf16>
    %6 = arith.mulf %1, %5 : vector<6x8x16xbf16>
    "tpu.trace_start"() <{level = 10 : i32, message = "bqd,bkd->bqk"}> : () -> ()
    %cst_7 = arith.constant dense<0.000000e+00> : vector<6x8x8xf32>
    %7 = tpu.matmul %6, %1, %cst_7 {dimension_numbers = #tpu.dot_dimension_numbers<[2], [2], [1], [1], [0, 0, 0, 1, 1, 1], [0], [0]>} : vector<6x8x16xbf16>, vector<6x8x16xbf16>, vector<6x8x8xf32> -> vector<6x8x8xf32>
    "tpu.trace_stop"() : () -> ()
    %8 = arith.addf %4, %7 : vector<6x8x8xf32>
    %cst_8 = arith.constant dense<0xFF800000> : vector<6x8xf32>
    %9 = vector.multi_reduction <maximumf>, %8, %cst_8 [2] : vector<6x8x8xf32> to vector<6x8xf32>
    %10 = vector.shape_cast %9 : vector<6x8xf32> to vector<6x8x1xf32>
    %11 = vector.broadcast %10 : vector<6x8x1xf32> to vector<6x8x8xf32>
    %12 = arith.subf %8, %11 : vector<6x8x8xf32>
    %13 = math.exp %12 : vector<6x8x8xf32>
    %cst_9 = arith.constant dense<0.000000e+00> : vector<6x8xf32>
    %14 = vector.multi_reduction <add>, %13, %cst_9 [2] : vector<6x8x8xf32> to vector<6x8xf32>
    %15 = vector.shape_cast %14 : vector<6x8xf32> to vector<6x8x1xf32>
    %16 = tpu.reciprocal %15 {approx = true} : vector<6x8x1xf32> -> vector<6x8x1xf32>
    %17 = vector.broadcast %16 : vector<6x8x1xf32> to vector<6x8x8xf32>
    %18 = arith.mulf %13, %17 : vector<6x8x8xf32>
    %c0_10 = arith.constant 0 : index
    %c0_11 = arith.constant 0 : index
    %c0_12 = arith.constant 0 : index
    %19 = vector.load %arg4[%c0_10, %c0_11, %c0_12] : memref<6x8x8xf32, #tpu.memory_space<vmem>>, vector<6x8x8xf32>
    tpu.vector_store %arg4[%c0_10, %c0_11, %c0_12], %18 {strides = array<i32>} : memref<6x8x8xf32, #tpu.memory_space<vmem>>, vector<6x8x8xf32>,
    %cst_13 = arith.constant dense<0.000000e+00> : vector<6x8xf32>
    %20 = vector.multi_reduction <add>, %18, %cst_13 [1] : vector<6x8x8xf32> to vector<6x8xf32>
    %21 = vector.shape_cast %20 : vector<6x8xf32> to vector<6x8x1xf32>
    %22 = arith.extf %0 : vector<6x8x16xbf16> to vector<6x8x16xf32>
    %23 = vector.broadcast %21 : vector<6x8x1xf32> to vector<6x8x16xf32>
    %24 = arith.mulf %23, %22 : vector<6x8x16xf32>
    %cst_14 = arith.constant dense<0.000000e+00> : vector<6x16xf32>
    %25 = vector.multi_reduction <add>, %24, %cst_14 [1] : vector<6x8x16xf32> to vector<6x16xf32>
    %26 = vector.shape_cast %20 : vector<6x8xf32> to vector<6x8x1xf32>
    %27 = arith.extf %1 : vector<6x8x16xbf16> to vector<6x8x16xf32>
    %28 = vector.broadcast %26 : vector<6x8x1xf32> to vector<6x8x16xf32>
    %29 = arith.mulf %28, %27 : vector<6x8x16xf32>
    %cst_15 = arith.constant dense<0.000000e+00> : vector<6x16xf32>
    %30 = vector.multi_reduction <add>, %29, %cst_15 [1] : vector<6x8x16xf32> to vector<6x16xf32>
    %c0_16 = arith.constant 0 : index
    %c0_17 = arith.constant 0 : index
    %31 = vector.load %arg3[%c0_16, %c0_17] : memref<6x32xf32, #tpu.memory_space<vmem>>, vector<6x16xf32>
    tpu.vector_store %arg3[%c0_16, %c0_17], %25 {strides = array<i32>} : memref<6x32xf32, #tpu.memory_space<vmem>>, vector<6x16xf32>,
    %c0_18 = arith.constant 0 : index
    %c16 = arith.constant 16 : index
    %32 = vector.load %arg3[%c0_18, %c16] : memref<6x32xf32, #tpu.memory_space<vmem>>, vector<6x16xf32>
    tpu.vector_store %arg3[%c0_18, %c16], %30 {strides = array<i32>} : memref<6x32xf32, #tpu.memory_space<vmem>>, vector<6x16xf32>,
    return
  }
  func.func @transform_0(%arg0: i32) -> (i32, i32, i32) {
    %c0_i32 = arith.constant 0 : i32
    %c0_i32_0 = arith.constant 0 : i32
    %c0_i32_1 = arith.constant 0 : i32
    return %arg0, %c0_i32, %c0_i32_0 : i32, i32, i32
  }
  func.func @transform_1(%arg0: i32) -> (i32, i32, i32) {
    %c0_i32 = arith.constant 0 : i32
    %c0_i32_0 = arith.constant 0 : i32
    %c0_i32_1 = arith.constant 0 : i32
    return %arg0, %c0_i32, %c0_i32_0 : i32, i32, i32
  }
  func.func @transform_2(%arg0: i32) -> (i32, i32) {
    %c0_i32 = arith.constant 0 : i32
    %c0_i32_0 = arith.constant 0 : i32
    return %arg0, %c0_i32 : i32, i32
  }
  func.func @transform_3(%arg0: i32) -> (i32, i32, i32) {
    %c0_i32 = arith.constant 0 : i32
    %c0_i32_0 = arith.constant 0 : i32
    %c0_i32_1 = arith.constant 0 : i32
    return %arg0, %c0_i32, %c0_i32_0 : i32, i32, i32
  }
}

module attributes {stable_mosaic.version = 11 : i64} {
  func.func @_gru_layer_kernel(%arg0: i32, %arg1: i32, %arg2: memref<8x6x48xf32, #tpu.memory_space<vmem>>, %arg3: memref<8x6x48xf32, #tpu.memory_space<vmem>>, %arg4: memref<32x96xf32, #tpu.memory_space<vmem>>, %arg5: memref<1x32xf32, #tpu.memory_space<vmem>>, %arg6: memref<8x6x16xf32, #tpu.memory_space<vmem>>, %arg7: memref<8x6x16xf32, #tpu.memory_space<vmem>>, %arg8: memref<6x32xf32, #tpu.memory_space<vmem>>) attributes {dimension_semantics = [#tpu.dimension_semantics<parallel>, #tpu.dimension_semantics<arbitrary>], iteration_bounds = array<i64: 1, 1>, scalar_prefetch = 0 : i64, scratch_operands = 1 : i64, tpu.core_type = #tpu.core_type<tc>, window_params = [{transform_indices = @transform_0, window_bounds = array<i64: 8, 6, 48>}, {transform_indices = @transform_1, window_bounds = array<i64: 8, 6, 48>}, {pipeline_mode = #tpu.pipeline_mode<synchronous>, transform_indices = @transform_2, window_bounds = array<i64: 32, 96>}, {pipeline_mode = #tpu.pipeline_mode<synchronous>, transform_indices = @transform_3, window_bounds = array<i64: 1, 32>}, {transform_indices = @transform_4, window_bounds = array<i64: 8, 6, 16>}, {transform_indices = @transform_5, window_bounds = array<i64: 8, 6, 16>}]} {
    %c0_i32 = arith.constant 0 : i32
    %0 = arith.cmpi eq, %arg1, %c0_i32 : i32
    %1 = arith.extui %0 : i1 to i32
    %c0_i32_0 = arith.constant 0 : i32
    %2 = arith.cmpi ne, %1, %c0_i32_0 : i32
    scf.if %2 {
      %cst_155 = arith.constant 0.000000e+00 : f32
      %487 = vector.broadcast %cst_155 : f32 to vector<6x32xf32>
      %c0_156 = arith.constant 0 : index
      %c0_157 = arith.constant 0 : index
      %488 = vector.load %arg8[%c0_156, %c0_157] : memref<6x32xf32, #tpu.memory_space<vmem>>, vector<6x32xf32>
      tpu.vector_store %arg8[%c0_156, %c0_157], %487 {strides = array<i32>} : memref<6x32xf32, #tpu.memory_space<vmem>>, vector<6x32xf32>,
    } else {
    }
    %c0 = arith.constant 0 : index
    %c0_1 = arith.constant 0 : index
    %3 = vector.load %arg4[%c0, %c0_1] : memref<32x96xf32, #tpu.memory_space<vmem>>, vector<32x96xf32>
    %c0_2 = arith.constant 0 : index
    %c0_3 = arith.constant 0 : index
    %4 = vector.load %arg5[%c0_2, %c0_3] : memref<1x32xf32, #tpu.memory_space<vmem>>, vector<1x32xf32>
    %5 = vector.shape_cast %4 : vector<1x32xf32> to vector<1x32xf32>
    %6 = vector.broadcast %5 : vector<1x32xf32> to vector<6x32xf32>
    %c0_i32_4 = arith.constant 0 : i32
    %7 = arith.index_cast %c0_i32_4 : i32 to index
    %c0_5 = arith.constant 0 : index
    %c0_6 = arith.constant 0 : index
    %8 = vector.load %arg2[%7, %c0_5, %c0_6] : memref<8x6x48xf32, #tpu.memory_space<vmem>>, vector<1x6x48xf32>
    %9 = vector.shape_cast %8 : vector<1x6x48xf32> to vector<6x48xf32>
    %c7_i32 = arith.constant 7 : i32
    %10 = arith.subi %c7_i32, %c0_i32_4 : i32
    %11 = arith.index_cast %10 : i32 to index
    %c0_7 = arith.constant 0 : index
    %c0_8 = arith.constant 0 : index
    %12 = vector.load %arg3[%11, %c0_7, %c0_8] : memref<8x6x48xf32, #tpu.memory_space<vmem>>, vector<1x6x48xf32>
    %13 = vector.shape_cast %12 : vector<1x6x48xf32> to vector<6x48xf32>
    %c0_9 = arith.constant 0 : index
    %c0_10 = arith.constant 0 : index
    %14 = vector.load %arg8[%c0_9, %c0_10] : memref<6x32xf32, #tpu.memory_space<vmem>>, vector<6x32xf32>
    %cst = arith.constant dense<0.000000e+00> : vector<6x96xf32>
    %15 = tpu.matmul %14, %3, %cst {dimension_numbers = #tpu.dot_dimension_numbers<[1], [0], [0], [1], [0, 0, 1, 1], [], []>} : vector<6x32xf32>, vector<32x96xf32>, vector<6x96xf32> -> vector<6x96xf32>
    %16 = vector.extract_strided_slice %9 {offsets = [0, 0], sizes = [6, 32], strides = [1, 1]} : vector<6x48xf32> to vector<6x32xf32>
    %17 = vector.extract_strided_slice %15 {offsets = [0, 0], sizes = [6, 32], strides = [1, 1]} : vector<6x96xf32> to vector<6x32xf32>
    %18 = arith.addf %16, %17 : vector<6x32xf32>
    %19 = arith.negf %18 : vector<6x32xf32>
    %20 = math.exp %19 : vector<6x32xf32>
    %cst_11 = arith.constant 1.000000e+00 : f32
    %21 = vector.broadcast %cst_11 : f32 to vector<6x32xf32>
    %22 = arith.addf %21, %20 : vector<6x32xf32>
    %23 = arith.divf %21, %22 : vector<6x32xf32>
    %24 = vector.extract_strided_slice %13 {offsets = [0, 0], sizes = [6, 32], strides = [1, 1]} : vector<6x48xf32> to vector<6x32xf32>
    %25 = vector.extract_strided_slice %15 {offsets = [0, 32], sizes = [6, 32], strides = [1, 1]} : vector<6x96xf32> to vector<6x32xf32>
    %26 = arith.addf %24, %25 : vector<6x32xf32>
    %27 = arith.negf %26 : vector<6x32xf32>
    %28 = math.exp %27 : vector<6x32xf32>
    %cst_12 = arith.constant 1.000000e+00 : f32
    %29 = vector.broadcast %cst_12 : f32 to vector<6x32xf32>
    %30 = arith.addf %29, %28 : vector<6x32xf32>
    %31 = arith.divf %29, %30 : vector<6x32xf32>
    %32 = vector.extract_strided_slice %15 {offsets = [0, 64], sizes = [6, 32], strides = [1, 1]} : vector<6x96xf32> to vector<6x32xf32>
    %33 = arith.addf %32, %6 : vector<6x32xf32>
    %34 = vector.extract_strided_slice %9 {offsets = [0, 32], sizes = [6, 16], strides = [1, 1]} : vector<6x48xf32> to vector<6x16xf32>
    %35 = vector.extract_strided_slice %23 {offsets = [0, 0], sizes = [6, 16], strides = [1, 1]} : vector<6x32xf32> to vector<6x16xf32>
    %36 = vector.extract_strided_slice %33 {offsets = [0, 0], sizes = [6, 16], strides = [1, 1]} : vector<6x32xf32> to vector<6x16xf32>
    %37 = arith.mulf %35, %36 : vector<6x16xf32>
    %38 = arith.addf %34, %37 : vector<6x16xf32>
    %39 = math.tanh %38 : vector<6x16xf32>
    %40 = vector.extract_strided_slice %13 {offsets = [0, 32], sizes = [6, 16], strides = [1, 1]} : vector<6x48xf32> to vector<6x16xf32>
    %41 = vector.extract_strided_slice %31 {offsets = [0, 0], sizes = [6, 16], strides = [1, 1]} : vector<6x32xf32> to vector<6x16xf32>
    %42 = vector.extract_strided_slice %33 {offsets = [0, 16], sizes = [6, 16], strides = [1, 1]} : vector<6x32xf32> to vector<6x16xf32>
    %43 = arith.mulf %41, %42 : vector<6x16xf32>
    %44 = arith.addf %40, %43 : vector<6x16xf32>
    %45 = math.tanh %44 : vector<6x16xf32>
    %46 = vector.extract_strided_slice %23 {offsets = [0, 16], sizes = [6, 16], strides = [1, 1]} : vector<6x32xf32> to vector<6x16xf32>
    %47 = vector.extract_strided_slice %14 {offsets = [0, 0], sizes = [6, 16], strides = [1, 1]} : vector<6x32xf32> to vector<6x16xf32>
    %48 = arith.subf %47, %39 : vector<6x16xf32>
    %49 = arith.mulf %46, %48 : vector<6x16xf32>
    %50 = arith.addf %39, %49 : vector<6x16xf32>
    %51 = vector.extract_strided_slice %31 {offsets = [0, 16], sizes = [6, 16], strides = [1, 1]} : vector<6x32xf32> to vector<6x16xf32>
    %52 = vector.extract_strided_slice %14 {offsets = [0, 16], sizes = [6, 16], strides = [1, 1]} : vector<6x32xf32> to vector<6x16xf32>
    %53 = arith.subf %52, %45 : vector<6x16xf32>
    %54 = arith.mulf %51, %53 : vector<6x16xf32>
    %55 = arith.addf %45, %54 : vector<6x16xf32>
    %c0_13 = arith.constant 0 : index
    %c0_14 = arith.constant 0 : index
    %56 = vector.load %arg8[%c0_13, %c0_14] : memref<6x32xf32, #tpu.memory_space<vmem>>, vector<6x16xf32>
    tpu.vector_store %arg8[%c0_13, %c0_14], %50 {strides = array<i32>} : memref<6x32xf32, #tpu.memory_space<vmem>>, vector<6x16xf32>,
    %c0_15 = arith.constant 0 : index
    %c16 = arith.constant 16 : index
    %57 = vector.load %arg8[%c0_15, %c16] : memref<6x32xf32, #tpu.memory_space<vmem>>, vector<6x16xf32>
    tpu.vector_store %arg8[%c0_15, %c16], %55 {strides = array<i32>} : memref<6x32xf32, #tpu.memory_space<vmem>>, vector<6x16xf32>,
    %58 = arith.index_cast %c0_i32_4 : i32 to index
    %c0_16 = arith.constant 0 : index
    %c0_17 = arith.constant 0 : index
    %59 = vector.load %arg6[%58, %c0_16, %c0_17] : memref<8x6x16xf32, #tpu.memory_space<vmem>>, vector<1x6x16xf32>
    %60 = vector.shape_cast %59 : vector<1x6x16xf32> to vector<6x16xf32>
    %61 = vector.shape_cast %50 : vector<6x16xf32> to vector<1x6x16xf32>
    tpu.vector_store %arg6[%58, %c0_16, %c0_17], %61 {strides = array<i32>} : memref<8x6x16xf32, #tpu.memory_space<vmem>>, vector<1x6x16xf32>,
    %c7_i32_18 = arith.constant 7 : i32
    %62 = arith.subi %c7_i32_18, %c0_i32_4 : i32
    %63 = arith.index_cast %62 : i32 to index
    %c0_19 = arith.constant 0 : index
    %c0_20 = arith.constant 0 : index
    %64 = vector.load %arg7[%63, %c0_19, %c0_20] : memref<8x6x16xf32, #tpu.memory_space<vmem>>, vector<1x6x16xf32>
    %65 = vector.shape_cast %64 : vector<1x6x16xf32> to vector<6x16xf32>
    %66 = vector.shape_cast %55 : vector<6x16xf32> to vector<1x6x16xf32>
    tpu.vector_store %arg7[%63, %c0_19, %c0_20], %66 {strides = array<i32>} : memref<8x6x16xf32, #tpu.memory_space<vmem>>, vector<1x6x16xf32>,
    %c1_i32 = arith.constant 1 : i32
    %67 = arith.index_cast %c1_i32 : i32 to index
    %c0_21 = arith.constant 0 : index
    %c0_22 = arith.constant 0 : index
    %68 = vector.load %arg2[%67, %c0_21, %c0_22] : memref<8x6x48xf32, #tpu.memory_space<vmem>>, vector<1x6x48xf32>
    %69 = vector.shape_cast %68 : vector<1x6x48xf32> to vector<6x48xf32>
    %c7_i32_23 = arith.constant 7 : i32
    %70 = arith.subi %c7_i32_23, %c1_i32 : i32
    %71 = arith.index_cast %70 : i32 to index
    %c0_24 = arith.constant 0 : index
    %c0_25 = arith.constant 0 : index
    %72 = vector.load %arg3[%71, %c0_24, %c0_25] : memref<8x6x48xf32, #tpu.memory_space<vmem>>, vector<1x6x48xf32>
    %73 = vector.shape_cast %72 : vector<1x6x48xf32> to vector<6x48xf32>
    %c0_26 = arith.constant 0 : index
    %c0_27 = arith.constant 0 : index
    %74 = vector.load %arg8[%c0_26, %c0_27] : memref<6x32xf32, #tpu.memory_space<vmem>>, vector<6x32xf32>
    %cst_28 = arith.constant dense<0.000000e+00> : vector<6x96xf32>
    %75 = tpu.matmul %74, %3, %cst_28 {dimension_numbers = #tpu.dot_dimension_numbers<[1], [0], [0], [1], [0, 0, 1, 1], [], []>} : vector<6x32xf32>, vector<32x96xf32>, vector<6x96xf32> -> vector<6x96xf32>
    %76 = vector.extract_strided_slice %69 {offsets = [0, 0], sizes = [6, 32], strides = [1, 1]} : vector<6x48xf32> to vector<6x32xf32>
    %77 = vector.extract_strided_slice %75 {offsets = [0, 0], sizes = [6, 32], strides = [1, 1]} : vector<6x96xf32> to vector<6x32xf32>
    %78 = arith.addf %76, %77 : vector<6x32xf32>
    %79 = arith.negf %78 : vector<6x32xf32>
    %80 = math.exp %79 : vector<6x32xf32>
    %cst_29 = arith.constant 1.000000e+00 : f32
    %81 = vector.broadcast %cst_29 : f32 to vector<6x32xf32>
    %82 = arith.addf %81, %80 : vector<6x32xf32>
    %83 = arith.divf %81, %82 : vector<6x32xf32>
    %84 = vector.extract_strided_slice %73 {offsets = [0, 0], sizes = [6, 32], strides = [1, 1]} : vector<6x48xf32> to vector<6x32xf32>
    %85 = vector.extract_strided_slice %75 {offsets = [0, 32], sizes = [6, 32], strides = [1, 1]} : vector<6x96xf32> to vector<6x32xf32>
    %86 = arith.addf %84, %85 : vector<6x32xf32>
    %87 = arith.negf %86 : vector<6x32xf32>
    %88 = math.exp %87 : vector<6x32xf32>
    %cst_30 = arith.constant 1.000000e+00 : f32
    %89 = vector.broadcast %cst_30 : f32 to vector<6x32xf32>
    %90 = arith.addf %89, %88 : vector<6x32xf32>
    %91 = arith.divf %89, %90 : vector<6x32xf32>
    %92 = vector.extract_strided_slice %75 {offsets = [0, 64], sizes = [6, 32], strides = [1, 1]} : vector<6x96xf32> to vector<6x32xf32>
    %93 = arith.addf %92, %6 : vector<6x32xf32>
    %94 = vector.extract_strided_slice %69 {offsets = [0, 32], sizes = [6, 16], strides = [1, 1]} : vector<6x48xf32> to vector<6x16xf32>
    %95 = vector.extract_strided_slice %83 {offsets = [0, 0], sizes = [6, 16], strides = [1, 1]} : vector<6x32xf32> to vector<6x16xf32>
    %96 = vector.extract_strided_slice %93 {offsets = [0, 0], sizes = [6, 16], strides = [1, 1]} : vector<6x32xf32> to vector<6x16xf32>
    %97 = arith.mulf %95, %96 : vector<6x16xf32>
    %98 = arith.addf %94, %97 : vector<6x16xf32>
    %99 = math.tanh %98 : vector<6x16xf32>
    %100 = vector.extract_strided_slice %73 {offsets = [0, 32], sizes = [6, 16], strides = [1, 1]} : vector<6x48xf32> to vector<6x16xf32>
    %101 = vector.extract_strided_slice %91 {offsets = [0, 0], sizes = [6, 16], strides = [1, 1]} : vector<6x32xf32> to vector<6x16xf32>
    %102 = vector.extract_strided_slice %93 {offsets = [0, 16], sizes = [6, 16], strides = [1, 1]} : vector<6x32xf32> to vector<6x16xf32>
    %103 = arith.mulf %101, %102 : vector<6x16xf32>
    %104 = arith.addf %100, %103 : vector<6x16xf32>
    %105 = math.tanh %104 : vector<6x16xf32>
    %106 = vector.extract_strided_slice %83 {offsets = [0, 16], sizes = [6, 16], strides = [1, 1]} : vector<6x32xf32> to vector<6x16xf32>
    %107 = vector.extract_strided_slice %74 {offsets = [0, 0], sizes = [6, 16], strides = [1, 1]} : vector<6x32xf32> to vector<6x16xf32>
    %108 = arith.subf %107, %99 : vector<6x16xf32>
    %109 = arith.mulf %106, %108 : vector<6x16xf32>
    %110 = arith.addf %99, %109 : vector<6x16xf32>
    %111 = vector.extract_strided_slice %91 {offsets = [0, 16], sizes = [6, 16], strides = [1, 1]} : vector<6x32xf32> to vector<6x16xf32>
    %112 = vector.extract_strided_slice %74 {offsets = [0, 16], sizes = [6, 16], strides = [1, 1]} : vector<6x32xf32> to vector<6x16xf32>
    %113 = arith.subf %112, %105 : vector<6x16xf32>
    %114 = arith.mulf %111, %113 : vector<6x16xf32>
    %115 = arith.addf %105, %114 : vector<6x16xf32>
    %c0_31 = arith.constant 0 : index
    %c0_32 = arith.constant 0 : index
    %116 = vector.load %arg8[%c0_31, %c0_32] : memref<6x32xf32, #tpu.memory_space<vmem>>, vector<6x16xf32>
    tpu.vector_store %arg8[%c0_31, %c0_32], %110 {strides = array<i32>} : memref<6x32xf32, #tpu.memory_space<vmem>>, vector<6x16xf32>,
    %c0_33 = arith.constant 0 : index
    %c16_34 = arith.constant 16 : index
    %117 = vector.load %arg8[%c0_33, %c16_34] : memref<6x32xf32, #tpu.memory_space<vmem>>, vector<6x16xf32>
    tpu.vector_store %arg8[%c0_33, %c16_34], %115 {strides = array<i32>} : memref<6x32xf32, #tpu.memory_space<vmem>>, vector<6x16xf32>,
    %118 = arith.index_cast %c1_i32 : i32 to index
    %c0_35 = arith.constant 0 : index
    %c0_36 = arith.constant 0 : index
    %119 = vector.load %arg6[%118, %c0_35, %c0_36] : memref<8x6x16xf32, #tpu.memory_space<vmem>>, vector<1x6x16xf32>
    %120 = vector.shape_cast %119 : vector<1x6x16xf32> to vector<6x16xf32>
    %121 = vector.shape_cast %110 : vector<6x16xf32> to vector<1x6x16xf32>
    tpu.vector_store %arg6[%118, %c0_35, %c0_36], %121 {strides = array<i32>} : memref<8x6x16xf32, #tpu.memory_space<vmem>>, vector<1x6x16xf32>,
    %c7_i32_37 = arith.constant 7 : i32
    %122 = arith.subi %c7_i32_37, %c1_i32 : i32
    %123 = arith.index_cast %122 : i32 to index
    %c0_38 = arith.constant 0 : index
    %c0_39 = arith.constant 0 : index
    %124 = vector.load %arg7[%123, %c0_38, %c0_39] : memref<8x6x16xf32, #tpu.memory_space<vmem>>, vector<1x6x16xf32>
    %125 = vector.shape_cast %124 : vector<1x6x16xf32> to vector<6x16xf32>
    %126 = vector.shape_cast %115 : vector<6x16xf32> to vector<1x6x16xf32>
    tpu.vector_store %arg7[%123, %c0_38, %c0_39], %126 {strides = array<i32>} : memref<8x6x16xf32, #tpu.memory_space<vmem>>, vector<1x6x16xf32>,
    %c2_i32 = arith.constant 2 : i32
    %127 = arith.index_cast %c2_i32 : i32 to index
    %c0_40 = arith.constant 0 : index
    %c0_41 = arith.constant 0 : index
    %128 = vector.load %arg2[%127, %c0_40, %c0_41] : memref<8x6x48xf32, #tpu.memory_space<vmem>>, vector<1x6x48xf32>
    %129 = vector.shape_cast %128 : vector<1x6x48xf32> to vector<6x48xf32>
    %c7_i32_42 = arith.constant 7 : i32
    %130 = arith.subi %c7_i32_42, %c2_i32 : i32
    %131 = arith.index_cast %130 : i32 to index
    %c0_43 = arith.constant 0 : index
    %c0_44 = arith.constant 0 : index
    %132 = vector.load %arg3[%131, %c0_43, %c0_44] : memref<8x6x48xf32, #tpu.memory_space<vmem>>, vector<1x6x48xf32>
    %133 = vector.shape_cast %132 : vector<1x6x48xf32> to vector<6x48xf32>
    %c0_45 = arith.constant 0 : index
    %c0_46 = arith.constant 0 : index
    %134 = vector.load %arg8[%c0_45, %c0_46] : memref<6x32xf32, #tpu.memory_space<vmem>>, vector<6x32xf32>
    %cst_47 = arith.constant dense<0.000000e+00> : vector<6x96xf32>
    %135 = tpu.matmul %134, %3, %cst_47 {dimension_numbers = #tpu.dot_dimension_numbers<[1], [0], [0], [1], [0, 0, 1, 1], [], []>} : vector<6x32xf32>, vector<32x96xf32>, vector<6x96xf32> -> vector<6x96xf32>
    %136 = vector.extract_strided_slice %129 {offsets = [0, 0], sizes = [6, 32], strides = [1, 1]} : vector<6x48xf32> to vector<6x32xf32>
    %137 = vector.extract_strided_slice %135 {offsets = [0, 0], sizes = [6, 32], strides = [1, 1]} : vector<6x96xf32> to vector<6x32xf32>
    %138 = arith.addf %136, %137 : vector<6x32xf32>
    %139 = arith.negf %138 : vector<6x32xf32>
    %140 = math.exp %139 : vector<6x32xf32>
    %cst_48 = arith.constant 1.000000e+00 : f32
    %141 = vector.broadcast %cst_48 : f32 to vector<6x32xf32>
    %142 = arith.addf %141, %140 : vector<6x32xf32>
    %143 = arith.divf %141, %142 : vector<6x32xf32>
    %144 = vector.extract_strided_slice %133 {offsets = [0, 0], sizes = [6, 32], strides = [1, 1]} : vector<6x48xf32> to vector<6x32xf32>
    %145 = vector.extract_strided_slice %135 {offsets = [0, 32], sizes = [6, 32], strides = [1, 1]} : vector<6x96xf32> to vector<6x32xf32>
    %146 = arith.addf %144, %145 : vector<6x32xf32>
    %147 = arith.negf %146 : vector<6x32xf32>
    %148 = math.exp %147 : vector<6x32xf32>
    %cst_49 = arith.constant 1.000000e+00 : f32
    %149 = vector.broadcast %cst_49 : f32 to vector<6x32xf32>
    %150 = arith.addf %149, %148 : vector<6x32xf32>
    %151 = arith.divf %149, %150 : vector<6x32xf32>
    %152 = vector.extract_strided_slice %135 {offsets = [0, 64], sizes = [6, 32], strides = [1, 1]} : vector<6x96xf32> to vector<6x32xf32>
    %153 = arith.addf %152, %6 : vector<6x32xf32>
    %154 = vector.extract_strided_slice %129 {offsets = [0, 32], sizes = [6, 16], strides = [1, 1]} : vector<6x48xf32> to vector<6x16xf32>
    %155 = vector.extract_strided_slice %143 {offsets = [0, 0], sizes = [6, 16], strides = [1, 1]} : vector<6x32xf32> to vector<6x16xf32>
    %156 = vector.extract_strided_slice %153 {offsets = [0, 0], sizes = [6, 16], strides = [1, 1]} : vector<6x32xf32> to vector<6x16xf32>
    %157 = arith.mulf %155, %156 : vector<6x16xf32>
    %158 = arith.addf %154, %157 : vector<6x16xf32>
    %159 = math.tanh %158 : vector<6x16xf32>
    %160 = vector.extract_strided_slice %133 {offsets = [0, 32], sizes = [6, 16], strides = [1, 1]} : vector<6x48xf32> to vector<6x16xf32>
    %161 = vector.extract_strided_slice %151 {offsets = [0, 0], sizes = [6, 16], strides = [1, 1]} : vector<6x32xf32> to vector<6x16xf32>
    %162 = vector.extract_strided_slice %153 {offsets = [0, 16], sizes = [6, 16], strides = [1, 1]} : vector<6x32xf32> to vector<6x16xf32>
    %163 = arith.mulf %161, %162 : vector<6x16xf32>
    %164 = arith.addf %160, %163 : vector<6x16xf32>
    %165 = math.tanh %164 : vector<6x16xf32>
    %166 = vector.extract_strided_slice %143 {offsets = [0, 16], sizes = [6, 16], strides = [1, 1]} : vector<6x32xf32> to vector<6x16xf32>
    %167 = vector.extract_strided_slice %134 {offsets = [0, 0], sizes = [6, 16], strides = [1, 1]} : vector<6x32xf32> to vector<6x16xf32>
    %168 = arith.subf %167, %159 : vector<6x16xf32>
    %169 = arith.mulf %166, %168 : vector<6x16xf32>
    %170 = arith.addf %159, %169 : vector<6x16xf32>
    %171 = vector.extract_strided_slice %151 {offsets = [0, 16], sizes = [6, 16], strides = [1, 1]} : vector<6x32xf32> to vector<6x16xf32>
    %172 = vector.extract_strided_slice %134 {offsets = [0, 16], sizes = [6, 16], strides = [1, 1]} : vector<6x32xf32> to vector<6x16xf32>
    %173 = arith.subf %172, %165 : vector<6x16xf32>
    %174 = arith.mulf %171, %173 : vector<6x16xf32>
    %175 = arith.addf %165, %174 : vector<6x16xf32>
    %c0_50 = arith.constant 0 : index
    %c0_51 = arith.constant 0 : index
    %176 = vector.load %arg8[%c0_50, %c0_51] : memref<6x32xf32, #tpu.memory_space<vmem>>, vector<6x16xf32>
    tpu.vector_store %arg8[%c0_50, %c0_51], %170 {strides = array<i32>} : memref<6x32xf32, #tpu.memory_space<vmem>>, vector<6x16xf32>,
    %c0_52 = arith.constant 0 : index
    %c16_53 = arith.constant 16 : index
    %177 = vector.load %arg8[%c0_52, %c16_53] : memref<6x32xf32, #tpu.memory_space<vmem>>, vector<6x16xf32>
    tpu.vector_store %arg8[%c0_52, %c16_53], %175 {strides = array<i32>} : memref<6x32xf32, #tpu.memory_space<vmem>>, vector<6x16xf32>,
    %178 = arith.index_cast %c2_i32 : i32 to index
    %c0_54 = arith.constant 0 : index
    %c0_55 = arith.constant 0 : index
    %179 = vector.load %arg6[%178, %c0_54, %c0_55] : memref<8x6x16xf32, #tpu.memory_space<vmem>>, vector<1x6x16xf32>
    %180 = vector.shape_cast %179 : vector<1x6x16xf32> to vector<6x16xf32>
    %181 = vector.shape_cast %170 : vector<6x16xf32> to vector<1x6x16xf32>
    tpu.vector_store %arg6[%178, %c0_54, %c0_55], %181 {strides = array<i32>} : memref<8x6x16xf32, #tpu.memory_space<vmem>>, vector<1x6x16xf32>,
    %c7_i32_56 = arith.constant 7 : i32
    %182 = arith.subi %c7_i32_56, %c2_i32 : i32
    %183 = arith.index_cast %182 : i32 to index
    %c0_57 = arith.constant 0 : index
    %c0_58 = arith.constant 0 : index
    %184 = vector.load %arg7[%183, %c0_57, %c0_58] : memref<8x6x16xf32, #tpu.memory_space<vmem>>, vector<1x6x16xf32>
    %185 = vector.shape_cast %184 : vector<1x6x16xf32> to vector<6x16xf32>
    %186 = vector.shape_cast %175 : vector<6x16xf32> to vector<1x6x16xf32>
    tpu.vector_store %arg7[%183, %c0_57, %c0_58], %186 {strides = array<i32>} : memref<8x6x16xf32, #tpu.memory_space<vmem>>, vector<1x6x16xf32>,
    %c3_i32 = arith.constant 3 : i32
    %187 = arith.index_cast %c3_i32 : i32 to index
    %c0_59 = arith.constant 0 : index
    %c0_60 = arith.constant 0 : index
    %188 = vector.load %arg2[%187, %c0_59, %c0_60] : memref<8x6x48xf32, #tpu.memory_space<vmem>>, vector<1x6x48xf32>
    %189 = vector.shape_cast %188 : vector<1x6x48xf32> to vector<6x48xf32>
    %c7_i32_61 = arith.constant 7 : i32
    %190 = arith.subi %c7_i32_61, %c3_i32 : i32
    %191 = arith.index_cast %190 : i32 to index
    %c0_62 = arith.constant 0 : index
    %c0_63 = arith.constant 0 : index
    %192 = vector.load %arg3[%191, %c0_62, %c0_63] : memref<8x6x48xf32, #tpu.memory_space<vmem>>, vector<1x6x48xf32>
    %193 = vector.shape_cast %192 : vector<1x6x48xf32> to vector<6x48xf32>
    %c0_64 = arith.constant 0 : index
    %c0_65 = arith.constant 0 : index
    %194 = vector.load %arg8[%c0_64, %c0_65] : memref<6x32xf32, #tpu.memory_space<vmem>>, vector<6x32xf32>
    %cst_66 = arith.constant dense<0.000000e+00> : vector<6x96xf32>
    %195 = tpu.matmul %194, %3, %cst_66 {dimension_numbers = #tpu.dot_dimension_numbers<[1], [0], [0], [1], [0, 0, 1, 1], [], []>} : vector<6x32xf32>, vector<32x96xf32>, vector<6x96xf32> -> vector<6x96xf32>
    %196 = vector.extract_strided_slice %189 {offsets = [0, 0], sizes = [6, 32], strides = [1, 1]} : vector<6x48xf32> to vector<6x32xf32>
    %197 = vector.extract_strided_slice %195 {offsets = [0, 0], sizes = [6, 32], strides = [1, 1]} : vector<6x96xf32> to vector<6x32xf32>
    %198 = arith.addf %196, %197 : vector<6x32xf32>
    %199 = arith.negf %198 : vector<6x32xf32>
    %200 = math.exp %199 : vector<6x32xf32>
    %cst_67 = arith.constant 1.000000e+00 : f32
    %201 = vector.broadcast %cst_67 : f32 to vector<6x32xf32>
    %202 = arith.addf %201, %200 : vector<6x32xf32>
    %203 = arith.divf %201, %202 : vector<6x32xf32>
    %204 = vector.extract_strided_slice %193 {offsets = [0, 0], sizes = [6, 32], strides = [1, 1]} : vector<6x48xf32> to vector<6x32xf32>
    %205 = vector.extract_strided_slice %195 {offsets = [0, 32], sizes = [6, 32], strides = [1, 1]} : vector<6x96xf32> to vector<6x32xf32>
    %206 = arith.addf %204, %205 : vector<6x32xf32>
    %207 = arith.negf %206 : vector<6x32xf32>
    %208 = math.exp %207 : vector<6x32xf32>
    %cst_68 = arith.constant 1.000000e+00 : f32
    %209 = vector.broadcast %cst_68 : f32 to vector<6x32xf32>
    %210 = arith.addf %209, %208 : vector<6x32xf32>
    %211 = arith.divf %209, %210 : vector<6x32xf32>
    %212 = vector.extract_strided_slice %195 {offsets = [0, 64], sizes = [6, 32], strides = [1, 1]} : vector<6x96xf32> to vector<6x32xf32>
    %213 = arith.addf %212, %6 : vector<6x32xf32>
    %214 = vector.extract_strided_slice %189 {offsets = [0, 32], sizes = [6, 16], strides = [1, 1]} : vector<6x48xf32> to vector<6x16xf32>
    %215 = vector.extract_strided_slice %203 {offsets = [0, 0], sizes = [6, 16], strides = [1, 1]} : vector<6x32xf32> to vector<6x16xf32>
    %216 = vector.extract_strided_slice %213 {offsets = [0, 0], sizes = [6, 16], strides = [1, 1]} : vector<6x32xf32> to vector<6x16xf32>
    %217 = arith.mulf %215, %216 : vector<6x16xf32>
    %218 = arith.addf %214, %217 : vector<6x16xf32>
    %219 = math.tanh %218 : vector<6x16xf32>
    %220 = vector.extract_strided_slice %193 {offsets = [0, 32], sizes = [6, 16], strides = [1, 1]} : vector<6x48xf32> to vector<6x16xf32>
    %221 = vector.extract_strided_slice %211 {offsets = [0, 0], sizes = [6, 16], strides = [1, 1]} : vector<6x32xf32> to vector<6x16xf32>
    %222 = vector.extract_strided_slice %213 {offsets = [0, 16], sizes = [6, 16], strides = [1, 1]} : vector<6x32xf32> to vector<6x16xf32>
    %223 = arith.mulf %221, %222 : vector<6x16xf32>
    %224 = arith.addf %220, %223 : vector<6x16xf32>
    %225 = math.tanh %224 : vector<6x16xf32>
    %226 = vector.extract_strided_slice %203 {offsets = [0, 16], sizes = [6, 16], strides = [1, 1]} : vector<6x32xf32> to vector<6x16xf32>
    %227 = vector.extract_strided_slice %194 {offsets = [0, 0], sizes = [6, 16], strides = [1, 1]} : vector<6x32xf32> to vector<6x16xf32>
    %228 = arith.subf %227, %219 : vector<6x16xf32>
    %229 = arith.mulf %226, %228 : vector<6x16xf32>
    %230 = arith.addf %219, %229 : vector<6x16xf32>
    %231 = vector.extract_strided_slice %211 {offsets = [0, 16], sizes = [6, 16], strides = [1, 1]} : vector<6x32xf32> to vector<6x16xf32>
    %232 = vector.extract_strided_slice %194 {offsets = [0, 16], sizes = [6, 16], strides = [1, 1]} : vector<6x32xf32> to vector<6x16xf32>
    %233 = arith.subf %232, %225 : vector<6x16xf32>
    %234 = arith.mulf %231, %233 : vector<6x16xf32>
    %235 = arith.addf %225, %234 : vector<6x16xf32>
    %c0_69 = arith.constant 0 : index
    %c0_70 = arith.constant 0 : index
    %236 = vector.load %arg8[%c0_69, %c0_70] : memref<6x32xf32, #tpu.memory_space<vmem>>, vector<6x16xf32>
    tpu.vector_store %arg8[%c0_69, %c0_70], %230 {strides = array<i32>} : memref<6x32xf32, #tpu.memory_space<vmem>>, vector<6x16xf32>,
    %c0_71 = arith.constant 0 : index
    %c16_72 = arith.constant 16 : index
    %237 = vector.load %arg8[%c0_71, %c16_72] : memref<6x32xf32, #tpu.memory_space<vmem>>, vector<6x16xf32>
    tpu.vector_store %arg8[%c0_71, %c16_72], %235 {strides = array<i32>} : memref<6x32xf32, #tpu.memory_space<vmem>>, vector<6x16xf32>,
    %238 = arith.index_cast %c3_i32 : i32 to index
    %c0_73 = arith.constant 0 : index
    %c0_74 = arith.constant 0 : index
    %239 = vector.load %arg6[%238, %c0_73, %c0_74] : memref<8x6x16xf32, #tpu.memory_space<vmem>>, vector<1x6x16xf32>
    %240 = vector.shape_cast %239 : vector<1x6x16xf32> to vector<6x16xf32>
    %241 = vector.shape_cast %230 : vector<6x16xf32> to vector<1x6x16xf32>
    tpu.vector_store %arg6[%238, %c0_73, %c0_74], %241 {strides = array<i32>} : memref<8x6x16xf32, #tpu.memory_space<vmem>>, vector<1x6x16xf32>,
    %c7_i32_75 = arith.constant 7 : i32
    %242 = arith.subi %c7_i32_75, %c3_i32 : i32
    %243 = arith.index_cast %242 : i32 to index
    %c0_76 = arith.constant 0 : index
    %c0_77 = arith.constant 0 : index
    %244 = vector.load %arg7[%243, %c0_76, %c0_77] : memref<8x6x16xf32, #tpu.memory_space<vmem>>, vector<1x6x16xf32>
    %245 = vector.shape_cast %244 : vector<1x6x16xf32> to vector<6x16xf32>
    %246 = vector.shape_cast %235 : vector<6x16xf32> to vector<1x6x16xf32>
    tpu.vector_store %arg7[%243, %c0_76, %c0_77], %246 {strides = array<i32>} : memref<8x6x16xf32, #tpu.memory_space<vmem>>, vector<1x6x16xf32>,
    %c4_i32 = arith.constant 4 : i32
    %247 = arith.index_cast %c4_i32 : i32 to index
    %c0_78 = arith.constant 0 : index
    %c0_79 = arith.constant 0 : index
    %248 = vector.load %arg2[%247, %c0_78, %c0_79] : memref<8x6x48xf32, #tpu.memory_space<vmem>>, vector<1x6x48xf32>
    %249 = vector.shape_cast %248 : vector<1x6x48xf32> to vector<6x48xf32>
    %c7_i32_80 = arith.constant 7 : i32
    %250 = arith.subi %c7_i32_80, %c4_i32 : i32
    %251 = arith.index_cast %250 : i32 to index
    %c0_81 = arith.constant 0 : index
    %c0_82 = arith.constant 0 : index
    %252 = vector.load %arg3[%251, %c0_81, %c0_82] : memref<8x6x48xf32, #tpu.memory_space<vmem>>, vector<1x6x48xf32>
    %253 = vector.shape_cast %252 : vector<1x6x48xf32> to vector<6x48xf32>
    %c0_83 = arith.constant 0 : index
    %c0_84 = arith.constant 0 : index
    %254 = vector.load %arg8[%c0_83, %c0_84] : memref<6x32xf32, #tpu.memory_space<vmem>>, vector<6x32xf32>
    %cst_85 = arith.constant dense<0.000000e+00> : vector<6x96xf32>
    %255 = tpu.matmul %254, %3, %cst_85 {dimension_numbers = #tpu.dot_dimension_numbers<[1], [0], [0], [1], [0, 0, 1, 1], [], []>} : vector<6x32xf32>, vector<32x96xf32>, vector<6x96xf32> -> vector<6x96xf32>
    %256 = vector.extract_strided_slice %249 {offsets = [0, 0], sizes = [6, 32], strides = [1, 1]} : vector<6x48xf32> to vector<6x32xf32>
    %257 = vector.extract_strided_slice %255 {offsets = [0, 0], sizes = [6, 32], strides = [1, 1]} : vector<6x96xf32> to vector<6x32xf32>
    %258 = arith.addf %256, %257 : vector<6x32xf32>
    %259 = arith.negf %258 : vector<6x32xf32>
    %260 = math.exp %259 : vector<6x32xf32>
    %cst_86 = arith.constant 1.000000e+00 : f32
    %261 = vector.broadcast %cst_86 : f32 to vector<6x32xf32>
    %262 = arith.addf %261, %260 : vector<6x32xf32>
    %263 = arith.divf %261, %262 : vector<6x32xf32>
    %264 = vector.extract_strided_slice %253 {offsets = [0, 0], sizes = [6, 32], strides = [1, 1]} : vector<6x48xf32> to vector<6x32xf32>
    %265 = vector.extract_strided_slice %255 {offsets = [0, 32], sizes = [6, 32], strides = [1, 1]} : vector<6x96xf32> to vector<6x32xf32>
    %266 = arith.addf %264, %265 : vector<6x32xf32>
    %267 = arith.negf %266 : vector<6x32xf32>
    %268 = math.exp %267 : vector<6x32xf32>
    %cst_87 = arith.constant 1.000000e+00 : f32
    %269 = vector.broadcast %cst_87 : f32 to vector<6x32xf32>
    %270 = arith.addf %269, %268 : vector<6x32xf32>
    %271 = arith.divf %269, %270 : vector<6x32xf32>
    %272 = vector.extract_strided_slice %255 {offsets = [0, 64], sizes = [6, 32], strides = [1, 1]} : vector<6x96xf32> to vector<6x32xf32>
    %273 = arith.addf %272, %6 : vector<6x32xf32>
    %274 = vector.extract_strided_slice %249 {offsets = [0, 32], sizes = [6, 16], strides = [1, 1]} : vector<6x48xf32> to vector<6x16xf32>
    %275 = vector.extract_strided_slice %263 {offsets = [0, 0], sizes = [6, 16], strides = [1, 1]} : vector<6x32xf32> to vector<6x16xf32>
    %276 = vector.extract_strided_slice %273 {offsets = [0, 0], sizes = [6, 16], strides = [1, 1]} : vector<6x32xf32> to vector<6x16xf32>
    %277 = arith.mulf %275, %276 : vector<6x16xf32>
    %278 = arith.addf %274, %277 : vector<6x16xf32>
    %279 = math.tanh %278 : vector<6x16xf32>
    %280 = vector.extract_strided_slice %253 {offsets = [0, 32], sizes = [6, 16], strides = [1, 1]} : vector<6x48xf32> to vector<6x16xf32>
    %281 = vector.extract_strided_slice %271 {offsets = [0, 0], sizes = [6, 16], strides = [1, 1]} : vector<6x32xf32> to vector<6x16xf32>
    %282 = vector.extract_strided_slice %273 {offsets = [0, 16], sizes = [6, 16], strides = [1, 1]} : vector<6x32xf32> to vector<6x16xf32>
    %283 = arith.mulf %281, %282 : vector<6x16xf32>
    %284 = arith.addf %280, %283 : vector<6x16xf32>
    %285 = math.tanh %284 : vector<6x16xf32>
    %286 = vector.extract_strided_slice %263 {offsets = [0, 16], sizes = [6, 16], strides = [1, 1]} : vector<6x32xf32> to vector<6x16xf32>
    %287 = vector.extract_strided_slice %254 {offsets = [0, 0], sizes = [6, 16], strides = [1, 1]} : vector<6x32xf32> to vector<6x16xf32>
    %288 = arith.subf %287, %279 : vector<6x16xf32>
    %289 = arith.mulf %286, %288 : vector<6x16xf32>
    %290 = arith.addf %279, %289 : vector<6x16xf32>
    %291 = vector.extract_strided_slice %271 {offsets = [0, 16], sizes = [6, 16], strides = [1, 1]} : vector<6x32xf32> to vector<6x16xf32>
    %292 = vector.extract_strided_slice %254 {offsets = [0, 16], sizes = [6, 16], strides = [1, 1]} : vector<6x32xf32> to vector<6x16xf32>
    %293 = arith.subf %292, %285 : vector<6x16xf32>
    %294 = arith.mulf %291, %293 : vector<6x16xf32>
    %295 = arith.addf %285, %294 : vector<6x16xf32>
    %c0_88 = arith.constant 0 : index
    %c0_89 = arith.constant 0 : index
    %296 = vector.load %arg8[%c0_88, %c0_89] : memref<6x32xf32, #tpu.memory_space<vmem>>, vector<6x16xf32>
    tpu.vector_store %arg8[%c0_88, %c0_89], %290 {strides = array<i32>} : memref<6x32xf32, #tpu.memory_space<vmem>>, vector<6x16xf32>,
    %c0_90 = arith.constant 0 : index
    %c16_91 = arith.constant 16 : index
    %297 = vector.load %arg8[%c0_90, %c16_91] : memref<6x32xf32, #tpu.memory_space<vmem>>, vector<6x16xf32>
    tpu.vector_store %arg8[%c0_90, %c16_91], %295 {strides = array<i32>} : memref<6x32xf32, #tpu.memory_space<vmem>>, vector<6x16xf32>,
    %298 = arith.index_cast %c4_i32 : i32 to index
    %c0_92 = arith.constant 0 : index
    %c0_93 = arith.constant 0 : index
    %299 = vector.load %arg6[%298, %c0_92, %c0_93] : memref<8x6x16xf32, #tpu.memory_space<vmem>>, vector<1x6x16xf32>
    %300 = vector.shape_cast %299 : vector<1x6x16xf32> to vector<6x16xf32>
    %301 = vector.shape_cast %290 : vector<6x16xf32> to vector<1x6x16xf32>
    tpu.vector_store %arg6[%298, %c0_92, %c0_93], %301 {strides = array<i32>} : memref<8x6x16xf32, #tpu.memory_space<vmem>>, vector<1x6x16xf32>,
    %c7_i32_94 = arith.constant 7 : i32
    %302 = arith.subi %c7_i32_94, %c4_i32 : i32
    %303 = arith.index_cast %302 : i32 to index
    %c0_95 = arith.constant 0 : index
    %c0_96 = arith.constant 0 : index
    %304 = vector.load %arg7[%303, %c0_95, %c0_96] : memref<8x6x16xf32, #tpu.memory_space<vmem>>, vector<1x6x16xf32>
    %305 = vector.shape_cast %304 : vector<1x6x16xf32> to vector<6x16xf32>
    %306 = vector.shape_cast %295 : vector<6x16xf32> to vector<1x6x16xf32>
    tpu.vector_store %arg7[%303, %c0_95, %c0_96], %306 {strides = array<i32>} : memref<8x6x16xf32, #tpu.memory_space<vmem>>, vector<1x6x16xf32>,
    %c5_i32 = arith.constant 5 : i32
    %307 = arith.index_cast %c5_i32 : i32 to index
    %c0_97 = arith.constant 0 : index
    %c0_98 = arith.constant 0 : index
    %308 = vector.load %arg2[%307, %c0_97, %c0_98] : memref<8x6x48xf32, #tpu.memory_space<vmem>>, vector<1x6x48xf32>
    %309 = vector.shape_cast %308 : vector<1x6x48xf32> to vector<6x48xf32>
    %c7_i32_99 = arith.constant 7 : i32
    %310 = arith.subi %c7_i32_99, %c5_i32 : i32
    %311 = arith.index_cast %310 : i32 to index
    %c0_100 = arith.constant 0 : index
    %c0_101 = arith.constant 0 : index
    %312 = vector.load %arg3[%311, %c0_100, %c0_101] : memref<8x6x48xf32, #tpu.memory_space<vmem>>, vector<1x6x48xf32>
    %313 = vector.shape_cast %312 : vector<1x6x48xf32> to vector<6x48xf32>
    %c0_102 = arith.constant 0 : index
    %c0_103 = arith.constant 0 : index
    %314 = vector.load %arg8[%c0_102, %c0_103] : memref<6x32xf32, #tpu.memory_space<vmem>>, vector<6x32xf32>
    %cst_104 = arith.constant dense<0.000000e+00> : vector<6x96xf32>
    %315 = tpu.matmul %314, %3, %cst_104 {dimension_numbers = #tpu.dot_dimension_numbers<[1], [0], [0], [1], [0, 0, 1, 1], [], []>} : vector<6x32xf32>, vector<32x96xf32>, vector<6x96xf32> -> vector<6x96xf32>
    %316 = vector.extract_strided_slice %309 {offsets = [0, 0], sizes = [6, 32], strides = [1, 1]} : vector<6x48xf32> to vector<6x32xf32>
    %317 = vector.extract_strided_slice %315 {offsets = [0, 0], sizes = [6, 32], strides = [1, 1]} : vector<6x96xf32> to vector<6x32xf32>
    %318 = arith.addf %316, %317 : vector<6x32xf32>
    %319 = arith.negf %318 : vector<6x32xf32>
    %320 = math.exp %319 : vector<6x32xf32>
    %cst_105 = arith.constant 1.000000e+00 : f32
    %321 = vector.broadcast %cst_105 : f32 to vector<6x32xf32>
    %322 = arith.addf %321, %320 : vector<6x32xf32>
    %323 = arith.divf %321, %322 : vector<6x32xf32>
    %324 = vector.extract_strided_slice %313 {offsets = [0, 0], sizes = [6, 32], strides = [1, 1]} : vector<6x48xf32> to vector<6x32xf32>
    %325 = vector.extract_strided_slice %315 {offsets = [0, 32], sizes = [6, 32], strides = [1, 1]} : vector<6x96xf32> to vector<6x32xf32>
    %326 = arith.addf %324, %325 : vector<6x32xf32>
    %327 = arith.negf %326 : vector<6x32xf32>
    %328 = math.exp %327 : vector<6x32xf32>
    %cst_106 = arith.constant 1.000000e+00 : f32
    %329 = vector.broadcast %cst_106 : f32 to vector<6x32xf32>
    %330 = arith.addf %329, %328 : vector<6x32xf32>
    %331 = arith.divf %329, %330 : vector<6x32xf32>
    %332 = vector.extract_strided_slice %315 {offsets = [0, 64], sizes = [6, 32], strides = [1, 1]} : vector<6x96xf32> to vector<6x32xf32>
    %333 = arith.addf %332, %6 : vector<6x32xf32>
    %334 = vector.extract_strided_slice %309 {offsets = [0, 32], sizes = [6, 16], strides = [1, 1]} : vector<6x48xf32> to vector<6x16xf32>
    %335 = vector.extract_strided_slice %323 {offsets = [0, 0], sizes = [6, 16], strides = [1, 1]} : vector<6x32xf32> to vector<6x16xf32>
    %336 = vector.extract_strided_slice %333 {offsets = [0, 0], sizes = [6, 16], strides = [1, 1]} : vector<6x32xf32> to vector<6x16xf32>
    %337 = arith.mulf %335, %336 : vector<6x16xf32>
    %338 = arith.addf %334, %337 : vector<6x16xf32>
    %339 = math.tanh %338 : vector<6x16xf32>
    %340 = vector.extract_strided_slice %313 {offsets = [0, 32], sizes = [6, 16], strides = [1, 1]} : vector<6x48xf32> to vector<6x16xf32>
    %341 = vector.extract_strided_slice %331 {offsets = [0, 0], sizes = [6, 16], strides = [1, 1]} : vector<6x32xf32> to vector<6x16xf32>
    %342 = vector.extract_strided_slice %333 {offsets = [0, 16], sizes = [6, 16], strides = [1, 1]} : vector<6x32xf32> to vector<6x16xf32>
    %343 = arith.mulf %341, %342 : vector<6x16xf32>
    %344 = arith.addf %340, %343 : vector<6x16xf32>
    %345 = math.tanh %344 : vector<6x16xf32>
    %346 = vector.extract_strided_slice %323 {offsets = [0, 16], sizes = [6, 16], strides = [1, 1]} : vector<6x32xf32> to vector<6x16xf32>
    %347 = vector.extract_strided_slice %314 {offsets = [0, 0], sizes = [6, 16], strides = [1, 1]} : vector<6x32xf32> to vector<6x16xf32>
    %348 = arith.subf %347, %339 : vector<6x16xf32>
    %349 = arith.mulf %346, %348 : vector<6x16xf32>
    %350 = arith.addf %339, %349 : vector<6x16xf32>
    %351 = vector.extract_strided_slice %331 {offsets = [0, 16], sizes = [6, 16], strides = [1, 1]} : vector<6x32xf32> to vector<6x16xf32>
    %352 = vector.extract_strided_slice %314 {offsets = [0, 16], sizes = [6, 16], strides = [1, 1]} : vector<6x32xf32> to vector<6x16xf32>
    %353 = arith.subf %352, %345 : vector<6x16xf32>
    %354 = arith.mulf %351, %353 : vector<6x16xf32>
    %355 = arith.addf %345, %354 : vector<6x16xf32>
    %c0_107 = arith.constant 0 : index
    %c0_108 = arith.constant 0 : index
    %356 = vector.load %arg8[%c0_107, %c0_108] : memref<6x32xf32, #tpu.memory_space<vmem>>, vector<6x16xf32>
    tpu.vector_store %arg8[%c0_107, %c0_108], %350 {strides = array<i32>} : memref<6x32xf32, #tpu.memory_space<vmem>>, vector<6x16xf32>,
    %c0_109 = arith.constant 0 : index
    %c16_110 = arith.constant 16 : index
    %357 = vector.load %arg8[%c0_109, %c16_110] : memref<6x32xf32, #tpu.memory_space<vmem>>, vector<6x16xf32>
    tpu.vector_store %arg8[%c0_109, %c16_110], %355 {strides = array<i32>} : memref<6x32xf32, #tpu.memory_space<vmem>>, vector<6x16xf32>,
    %358 = arith.index_cast %c5_i32 : i32 to index
    %c0_111 = arith.constant 0 : index
    %c0_112 = arith.constant 0 : index
    %359 = vector.load %arg6[%358, %c0_111, %c0_112] : memref<8x6x16xf32, #tpu.memory_space<vmem>>, vector<1x6x16xf32>
    %360 = vector.shape_cast %359 : vector<1x6x16xf32> to vector<6x16xf32>
    %361 = vector.shape_cast %350 : vector<6x16xf32> to vector<1x6x16xf32>
    tpu.vector_store %arg6[%358, %c0_111, %c0_112], %361 {strides = array<i32>} : memref<8x6x16xf32, #tpu.memory_space<vmem>>, vector<1x6x16xf32>,
    %c7_i32_113 = arith.constant 7 : i32
    %362 = arith.subi %c7_i32_113, %c5_i32 : i32
    %363 = arith.index_cast %362 : i32 to index
    %c0_114 = arith.constant 0 : index
    %c0_115 = arith.constant 0 : index
    %364 = vector.load %arg7[%363, %c0_114, %c0_115] : memref<8x6x16xf32, #tpu.memory_space<vmem>>, vector<1x6x16xf32>
    %365 = vector.shape_cast %364 : vector<1x6x16xf32> to vector<6x16xf32>
    %366 = vector.shape_cast %355 : vector<6x16xf32> to vector<1x6x16xf32>
    tpu.vector_store %arg7[%363, %c0_114, %c0_115], %366 {strides = array<i32>} : memref<8x6x16xf32, #tpu.memory_space<vmem>>, vector<1x6x16xf32>,
    %c6_i32 = arith.constant 6 : i32
    %367 = arith.index_cast %c6_i32 : i32 to index
    %c0_116 = arith.constant 0 : index
    %c0_117 = arith.constant 0 : index
    %368 = vector.load %arg2[%367, %c0_116, %c0_117] : memref<8x6x48xf32, #tpu.memory_space<vmem>>, vector<1x6x48xf32>
    %369 = vector.shape_cast %368 : vector<1x6x48xf32> to vector<6x48xf32>
    %c7_i32_118 = arith.constant 7 : i32
    %370 = arith.subi %c7_i32_118, %c6_i32 : i32
    %371 = arith.index_cast %370 : i32 to index
    %c0_119 = arith.constant 0 : index
    %c0_120 = arith.constant 0 : index
    %372 = vector.load %arg3[%371, %c0_119, %c0_120] : memref<8x6x48xf32, #tpu.memory_space<vmem>>, vector<1x6x48xf32>
    %373 = vector.shape_cast %372 : vector<1x6x48xf32> to vector<6x48xf32>
    %c0_121 = arith.constant 0 : index
    %c0_122 = arith.constant 0 : index
    %374 = vector.load %arg8[%c0_121, %c0_122] : memref<6x32xf32, #tpu.memory_space<vmem>>, vector<6x32xf32>
    %cst_123 = arith.constant dense<0.000000e+00> : vector<6x96xf32>
    %375 = tpu.matmul %374, %3, %cst_123 {dimension_numbers = #tpu.dot_dimension_numbers<[1], [0], [0], [1], [0, 0, 1, 1], [], []>} : vector<6x32xf32>, vector<32x96xf32>, vector<6x96xf32> -> vector<6x96xf32>
    %376 = vector.extract_strided_slice %369 {offsets = [0, 0], sizes = [6, 32], strides = [1, 1]} : vector<6x48xf32> to vector<6x32xf32>
    %377 = vector.extract_strided_slice %375 {offsets = [0, 0], sizes = [6, 32], strides = [1, 1]} : vector<6x96xf32> to vector<6x32xf32>
    %378 = arith.addf %376, %377 : vector<6x32xf32>
    %379 = arith.negf %378 : vector<6x32xf32>
    %380 = math.exp %379 : vector<6x32xf32>
    %cst_124 = arith.constant 1.000000e+00 : f32
    %381 = vector.broadcast %cst_124 : f32 to vector<6x32xf32>
    %382 = arith.addf %381, %380 : vector<6x32xf32>
    %383 = arith.divf %381, %382 : vector<6x32xf32>
    %384 = vector.extract_strided_slice %373 {offsets = [0, 0], sizes = [6, 32], strides = [1, 1]} : vector<6x48xf32> to vector<6x32xf32>
    %385 = vector.extract_strided_slice %375 {offsets = [0, 32], sizes = [6, 32], strides = [1, 1]} : vector<6x96xf32> to vector<6x32xf32>
    %386 = arith.addf %384, %385 : vector<6x32xf32>
    %387 = arith.negf %386 : vector<6x32xf32>
    %388 = math.exp %387 : vector<6x32xf32>
    %cst_125 = arith.constant 1.000000e+00 : f32
    %389 = vector.broadcast %cst_125 : f32 to vector<6x32xf32>
    %390 = arith.addf %389, %388 : vector<6x32xf32>
    %391 = arith.divf %389, %390 : vector<6x32xf32>
    %392 = vector.extract_strided_slice %375 {offsets = [0, 64], sizes = [6, 32], strides = [1, 1]} : vector<6x96xf32> to vector<6x32xf32>
    %393 = arith.addf %392, %6 : vector<6x32xf32>
    %394 = vector.extract_strided_slice %369 {offsets = [0, 32], sizes = [6, 16], strides = [1, 1]} : vector<6x48xf32> to vector<6x16xf32>
    %395 = vector.extract_strided_slice %383 {offsets = [0, 0], sizes = [6, 16], strides = [1, 1]} : vector<6x32xf32> to vector<6x16xf32>
    %396 = vector.extract_strided_slice %393 {offsets = [0, 0], sizes = [6, 16], strides = [1, 1]} : vector<6x32xf32> to vector<6x16xf32>
    %397 = arith.mulf %395, %396 : vector<6x16xf32>
    %398 = arith.addf %394, %397 : vector<6x16xf32>
    %399 = math.tanh %398 : vector<6x16xf32>
    %400 = vector.extract_strided_slice %373 {offsets = [0, 32], sizes = [6, 16], strides = [1, 1]} : vector<6x48xf32> to vector<6x16xf32>
    %401 = vector.extract_strided_slice %391 {offsets = [0, 0], sizes = [6, 16], strides = [1, 1]} : vector<6x32xf32> to vector<6x16xf32>
    %402 = vector.extract_strided_slice %393 {offsets = [0, 16], sizes = [6, 16], strides = [1, 1]} : vector<6x32xf32> to vector<6x16xf32>
    %403 = arith.mulf %401, %402 : vector<6x16xf32>
    %404 = arith.addf %400, %403 : vector<6x16xf32>
    %405 = math.tanh %404 : vector<6x16xf32>
    %406 = vector.extract_strided_slice %383 {offsets = [0, 16], sizes = [6, 16], strides = [1, 1]} : vector<6x32xf32> to vector<6x16xf32>
    %407 = vector.extract_strided_slice %374 {offsets = [0, 0], sizes = [6, 16], strides = [1, 1]} : vector<6x32xf32> to vector<6x16xf32>
    %408 = arith.subf %407, %399 : vector<6x16xf32>
    %409 = arith.mulf %406, %408 : vector<6x16xf32>
    %410 = arith.addf %399, %409 : vector<6x16xf32>
    %411 = vector.extract_strided_slice %391 {offsets = [0, 16], sizes = [6, 16], strides = [1, 1]} : vector<6x32xf32> to vector<6x16xf32>
    %412 = vector.extract_strided_slice %374 {offsets = [0, 16], sizes = [6, 16], strides = [1, 1]} : vector<6x32xf32> to vector<6x16xf32>
    %413 = arith.subf %412, %405 : vector<6x16xf32>
    %414 = arith.mulf %411, %413 : vector<6x16xf32>
    %415 = arith.addf %405, %414 : vector<6x16xf32>
    %c0_126 = arith.constant 0 : index
    %c0_127 = arith.constant 0 : index
    %416 = vector.load %arg8[%c0_126, %c0_127] : memref<6x32xf32, #tpu.memory_space<vmem>>, vector<6x16xf32>
    tpu.vector_store %arg8[%c0_126, %c0_127], %410 {strides = array<i32>} : memref<6x32xf32, #tpu.memory_space<vmem>>, vector<6x16xf32>,
    %c0_128 = arith.constant 0 : index
    %c16_129 = arith.constant 16 : index
    %417 = vector.load %arg8[%c0_128, %c16_129] : memref<6x32xf32, #tpu.memory_space<vmem>>, vector<6x16xf32>
    tpu.vector_store %arg8[%c0_128, %c16_129], %415 {strides = array<i32>} : memref<6x32xf32, #tpu.memory_space<vmem>>, vector<6x16xf32>,
    %418 = arith.index_cast %c6_i32 : i32 to index
    %c0_130 = arith.constant 0 : index
    %c0_131 = arith.constant 0 : index
    %419 = vector.load %arg6[%418, %c0_130, %c0_131] : memref<8x6x16xf32, #tpu.memory_space<vmem>>, vector<1x6x16xf32>
    %420 = vector.shape_cast %419 : vector<1x6x16xf32> to vector<6x16xf32>
    %421 = vector.shape_cast %410 : vector<6x16xf32> to vector<1x6x16xf32>
    tpu.vector_store %arg6[%418, %c0_130, %c0_131], %421 {strides = array<i32>} : memref<8x6x16xf32, #tpu.memory_space<vmem>>, vector<1x6x16xf32>,
    %c7_i32_132 = arith.constant 7 : i32
    %422 = arith.subi %c7_i32_132, %c6_i32 : i32
    %423 = arith.index_cast %422 : i32 to index
    %c0_133 = arith.constant 0 : index
    %c0_134 = arith.constant 0 : index
    %424 = vector.load %arg7[%423, %c0_133, %c0_134] : memref<8x6x16xf32, #tpu.memory_space<vmem>>, vector<1x6x16xf32>
    %425 = vector.shape_cast %424 : vector<1x6x16xf32> to vector<6x16xf32>
    %426 = vector.shape_cast %415 : vector<6x16xf32> to vector<1x6x16xf32>
    tpu.vector_store %arg7[%423, %c0_133, %c0_134], %426 {strides = array<i32>} : memref<8x6x16xf32, #tpu.memory_space<vmem>>, vector<1x6x16xf32>,
    %c7_i32_135 = arith.constant 7 : i32
    %427 = arith.index_cast %c7_i32_135 : i32 to index
    %c0_136 = arith.constant 0 : index
    %c0_137 = arith.constant 0 : index
    %428 = vector.load %arg2[%427, %c0_136, %c0_137] : memref<8x6x48xf32, #tpu.memory_space<vmem>>, vector<1x6x48xf32>
    %429 = vector.shape_cast %428 : vector<1x6x48xf32> to vector<6x48xf32>
    %c7_i32_138 = arith.constant 7 : i32
    %430 = arith.subi %c7_i32_138, %c7_i32_135 : i32
    %431 = arith.index_cast %430 : i32 to index
    %c0_139 = arith.constant 0 : index
    %c0_140 = arith.constant 0 : index
    %432 = vector.load %arg3[%431, %c0_139, %c0_140] : memref<8x6x48xf32, #tpu.memory_space<vmem>>, vector<1x6x48xf32>
    %433 = vector.shape_cast %432 : vector<1x6x48xf32> to vector<6x48xf32>
    %c0_141 = arith.constant 0 : index
    %c0_142 = arith.constant 0 : index
    %434 = vector.load %arg8[%c0_141, %c0_142] : memref<6x32xf32, #tpu.memory_space<vmem>>, vector<6x32xf32>
    %cst_143 = arith.constant dense<0.000000e+00> : vector<6x96xf32>
    %435 = tpu.matmul %434, %3, %cst_143 {dimension_numbers = #tpu.dot_dimension_numbers<[1], [0], [0], [1], [0, 0, 1, 1], [], []>} : vector<6x32xf32>, vector<32x96xf32>, vector<6x96xf32> -> vector<6x96xf32>
    %436 = vector.extract_strided_slice %429 {offsets = [0, 0], sizes = [6, 32], strides = [1, 1]} : vector<6x48xf32> to vector<6x32xf32>
    %437 = vector.extract_strided_slice %435 {offsets = [0, 0], sizes = [6, 32], strides = [1, 1]} : vector<6x96xf32> to vector<6x32xf32>
    %438 = arith.addf %436, %437 : vector<6x32xf32>
    %439 = arith.negf %438 : vector<6x32xf32>
    %440 = math.exp %439 : vector<6x32xf32>
    %cst_144 = arith.constant 1.000000e+00 : f32
    %441 = vector.broadcast %cst_144 : f32 to vector<6x32xf32>
    %442 = arith.addf %441, %440 : vector<6x32xf32>
    %443 = arith.divf %441, %442 : vector<6x32xf32>
    %444 = vector.extract_strided_slice %433 {offsets = [0, 0], sizes = [6, 32], strides = [1, 1]} : vector<6x48xf32> to vector<6x32xf32>
    %445 = vector.extract_strided_slice %435 {offsets = [0, 32], sizes = [6, 32], strides = [1, 1]} : vector<6x96xf32> to vector<6x32xf32>
    %446 = arith.addf %444, %445 : vector<6x32xf32>
    %447 = arith.negf %446 : vector<6x32xf32>
    %448 = math.exp %447 : vector<6x32xf32>
    %cst_145 = arith.constant 1.000000e+00 : f32
    %449 = vector.broadcast %cst_145 : f32 to vector<6x32xf32>
    %450 = arith.addf %449, %448 : vector<6x32xf32>
    %451 = arith.divf %449, %450 : vector<6x32xf32>
    %452 = vector.extract_strided_slice %435 {offsets = [0, 64], sizes = [6, 32], strides = [1, 1]} : vector<6x96xf32> to vector<6x32xf32>
    %453 = arith.addf %452, %6 : vector<6x32xf32>
    %454 = vector.extract_strided_slice %429 {offsets = [0, 32], sizes = [6, 16], strides = [1, 1]} : vector<6x48xf32> to vector<6x16xf32>
    %455 = vector.extract_strided_slice %443 {offsets = [0, 0], sizes = [6, 16], strides = [1, 1]} : vector<6x32xf32> to vector<6x16xf32>
    %456 = vector.extract_strided_slice %453 {offsets = [0, 0], sizes = [6, 16], strides = [1, 1]} : vector<6x32xf32> to vector<6x16xf32>
    %457 = arith.mulf %455, %456 : vector<6x16xf32>
    %458 = arith.addf %454, %457 : vector<6x16xf32>
    %459 = math.tanh %458 : vector<6x16xf32>
    %460 = vector.extract_strided_slice %433 {offsets = [0, 32], sizes = [6, 16], strides = [1, 1]} : vector<6x48xf32> to vector<6x16xf32>
    %461 = vector.extract_strided_slice %451 {offsets = [0, 0], sizes = [6, 16], strides = [1, 1]} : vector<6x32xf32> to vector<6x16xf32>
    %462 = vector.extract_strided_slice %453 {offsets = [0, 16], sizes = [6, 16], strides = [1, 1]} : vector<6x32xf32> to vector<6x16xf32>
    %463 = arith.mulf %461, %462 : vector<6x16xf32>
    %464 = arith.addf %460, %463 : vector<6x16xf32>
    %465 = math.tanh %464 : vector<6x16xf32>
    %466 = vector.extract_strided_slice %443 {offsets = [0, 16], sizes = [6, 16], strides = [1, 1]} : vector<6x32xf32> to vector<6x16xf32>
    %467 = vector.extract_strided_slice %434 {offsets = [0, 0], sizes = [6, 16], strides = [1, 1]} : vector<6x32xf32> to vector<6x16xf32>
    %468 = arith.subf %467, %459 : vector<6x16xf32>
    %469 = arith.mulf %466, %468 : vector<6x16xf32>
    %470 = arith.addf %459, %469 : vector<6x16xf32>
    %471 = vector.extract_strided_slice %451 {offsets = [0, 16], sizes = [6, 16], strides = [1, 1]} : vector<6x32xf32> to vector<6x16xf32>
    %472 = vector.extract_strided_slice %434 {offsets = [0, 16], sizes = [6, 16], strides = [1, 1]} : vector<6x32xf32> to vector<6x16xf32>
    %473 = arith.subf %472, %465 : vector<6x16xf32>
    %474 = arith.mulf %471, %473 : vector<6x16xf32>
    %475 = arith.addf %465, %474 : vector<6x16xf32>
    %c0_146 = arith.constant 0 : index
    %c0_147 = arith.constant 0 : index
    %476 = vector.load %arg8[%c0_146, %c0_147] : memref<6x32xf32, #tpu.memory_space<vmem>>, vector<6x16xf32>
    tpu.vector_store %arg8[%c0_146, %c0_147], %470 {strides = array<i32>} : memref<6x32xf32, #tpu.memory_space<vmem>>, vector<6x16xf32>,
    %c0_148 = arith.constant 0 : index
    %c16_149 = arith.constant 16 : index
    %477 = vector.load %arg8[%c0_148, %c16_149] : memref<6x32xf32, #tpu.memory_space<vmem>>, vector<6x16xf32>
    tpu.vector_store %arg8[%c0_148, %c16_149], %475 {strides = array<i32>} : memref<6x32xf32, #tpu.memory_space<vmem>>, vector<6x16xf32>,
    %478 = arith.index_cast %c7_i32_135 : i32 to index
    %c0_150 = arith.constant 0 : index
    %c0_151 = arith.constant 0 : index
    %479 = vector.load %arg6[%478, %c0_150, %c0_151] : memref<8x6x16xf32, #tpu.memory_space<vmem>>, vector<1x6x16xf32>
    %480 = vector.shape_cast %479 : vector<1x6x16xf32> to vector<6x16xf32>
    %481 = vector.shape_cast %470 : vector<6x16xf32> to vector<1x6x16xf32>
    tpu.vector_store %arg6[%478, %c0_150, %c0_151], %481 {strides = array<i32>} : memref<8x6x16xf32, #tpu.memory_space<vmem>>, vector<1x6x16xf32>,
    %c7_i32_152 = arith.constant 7 : i32
    %482 = arith.subi %c7_i32_152, %c7_i32_135 : i32
    %483 = arith.index_cast %482 : i32 to index
    %c0_153 = arith.constant 0 : index
    %c0_154 = arith.constant 0 : index
    %484 = vector.load %arg7[%483, %c0_153, %c0_154] : memref<8x6x16xf32, #tpu.memory_space<vmem>>, vector<1x6x16xf32>
    %485 = vector.shape_cast %484 : vector<1x6x16xf32> to vector<6x16xf32>
    %486 = vector.shape_cast %475 : vector<6x16xf32> to vector<1x6x16xf32>
    tpu.vector_store %arg7[%483, %c0_153, %c0_154], %486 {strides = array<i32>} : memref<8x6x16xf32, #tpu.memory_space<vmem>>, vector<1x6x16xf32>,
    %c8_i32 = arith.constant 8 : i32
    return
  }
  func.func @transform_0(%arg0: i32, %arg1: i32) -> (i32, i32, i32) {
    %c0_i32 = arith.constant 0 : i32
    %c0_i32_0 = arith.constant 0 : i32
    return %arg1, %arg0, %c0_i32 : i32, i32, i32
  }
  func.func @transform_1(%arg0: i32, %arg1: i32) -> (i32, i32, i32) {
    %c0_i32 = arith.constant 0 : i32
    %0 = arith.subi %c0_i32, %arg1 : i32
    %c0_i32_0 = arith.constant 0 : i32
    %c0_i32_1 = arith.constant 0 : i32
    return %0, %arg0, %c0_i32_0 : i32, i32, i32
  }
  func.func @transform_2(%arg0: i32, %arg1: i32) -> (i32, i32) {
    %c0_i32 = arith.constant 0 : i32
    %c0_i32_0 = arith.constant 0 : i32
    %c0_i32_1 = arith.constant 0 : i32
    return %c0_i32, %c0_i32_0 : i32, i32
  }
  func.func @transform_3(%arg0: i32, %arg1: i32) -> (i32, i32) {
    %c0_i32 = arith.constant 0 : i32
    %c0_i32_0 = arith.constant 0 : i32
    %c0_i32_1 = arith.constant 0 : i32
    return %c0_i32, %c0_i32_0 : i32, i32
  }
  func.func @transform_4(%arg0: i32, %arg1: i32) -> (i32, i32, i32) {
    %c0_i32 = arith.constant 0 : i32
    %c0_i32_0 = arith.constant 0 : i32
    return %arg1, %arg0, %c0_i32 : i32, i32, i32
  }
  func.func @transform_5(%arg0: i32, %arg1: i32) -> (i32, i32, i32) {
    %c0_i32 = arith.constant 0 : i32
    %0 = arith.subi %c0_i32, %arg1 : i32
    %c0_i32_0 = arith.constant 0 : i32
    %c0_i32_1 = arith.constant 0 : i32
    return %0, %arg0, %c0_i32_0 : i32, i32, i32
  }
}

</mosaic_0001>

<bundles_post_ra>
// kernel: word_attention_v2_forward.5
= control target key start
LH: loop header
LB: loop body
LE: loop exit
PB: predicated region body
PF: predicated region fallthrough
CT: control target
= control target key end

     0   :  { %vm40_vm0 = vcmask 130048   ;;  %v1049_v2 = vmov 0.0   ;;  %vm1050_vm1 = vmmov 0   ;;  %s1282_s0 = inlined_call_operand.vmem [shape: bf16[6,8,16], index: 0, kind: input, shape index: {}]   ;;  %s1283_s1 = inlined_call_operand.vmem [shape: bf16[6,8,16], index: 1, kind: input, shape index: {}]   ;;  %s1284_s2 = inlined_call_operand.vmem [shape: f32[6,32], index: 2, kind: output, shape index: {0}]   ;;  %s1285_s3 = inlined_call_operand.hbm [shape: f32[6,8,8], index: 3, kind: output, shape index: {1}]  }
   0x1   :  { %v1078_v0 = vld [vmem:[%s1283_s1] sm:$0xf]  ;;  %v1083_v1 = vld [vmem:[%s1283_s1 + $0x4] sm:$0xf]  ;;  %925 = vmatprep.subr.bf16.mxu0 %v1049_v2  ;;  %931 = vmatprep.subr.bf16.mxu1 %v1049_v2  ;;  %v1100_v5 = vld [vmem:[%s1283_s1 + $0x8] sm:$0xf] }
   0x2   :  { %v45_v3 = vsel %vm40_vm0, %v1078_v0, 0  ;;  %v91_v4 = vsel %vm40_vm0, %v1083_v1, 0  ;;  %927 = vmatprep.mubr.msk.bf16.mxu0 %vm1050_vm1, %v1049_v2  ;;  %933 = vmatprep.mubr.msk.bf16.mxu1 %vm1050_vm1, %v1049_v2  ;;  %v1105_v6 = vld [vmem:[%s1283_s1 + $0xc] sm:$0xf]  ;;  %v34_v7 = vmul.bf16 1043676725, %v1078_v0 }
   0x3   :  { %926 = vmatpush3.bf16.xpose.msra.mxu0 %v45_v3  ;;  %932 = vmatpush3.bf16.xpose.msra.mxu1 %v91_v4  ;;  %v35_v8 = vmul.bf16 1043676725, %v1083_v1  ;;  %v137_v9 = vsel %vm40_vm0, %v1100_v5, 0  ;;  %v183_v10 = vsel %vm40_vm0, %v1105_v6, 0 }
   0x4   :  { %937 = vmatprep.subr.bf16.mxu0 %v1049_v2  ;;  %943 = vmatprep.subr.bf16.mxu1 %v1049_v2 }
   0xa   :  { %928 = vmatmul.mubr.msk.bf16.vlgmr.msra.gmra.mxu0 %vm40_vm0, %v34_v7  ;;  %934 = vmatmul.mubr.msk.bf16.vlgmr.msra.gmra.mxu1 %vm40_vm0, %v35_v8 }
   0xb   :  { %938 = vmatpush3.bf16.xpose.msra.mxu0 %v137_v9  ;;  %944 = vmatpush3.bf16.xpose.msra.mxu1 %v183_v10 }
   0xc   :  { %939 = vmatprep.mubr.msk.bf16.mxu0 %vm1050_vm1, %v1049_v2  ;;  %945 = vmatprep.mubr.msk.bf16.mxu1 %vm1050_vm1, %v1049_v2 }
   0xd   :  { %9 = vsyncpa [#allocation3], 0  ;;  %949 = vmatprep.subr.bf16.mxu0 %v1049_v2  ;;  %955 = vmatprep.subr.bf16.mxu1 %v1049_v2  ;;  %v1124_v11 = vld [vmem:[%s1283_s1 + $0x10] sm:$0xf]  ;;  %v1129_v12 = vld [vmem:[%s1283_s1 + $0x14] sm:$0xf] }
   0xe   :  { %v36_v13 = vmul.bf16 1043676725, %v1100_v5  ;;  %v37_v14 = vmul.bf16 1043676725, %v1105_v6  ;;  %v229_v15 = vsel %vm40_vm0, %v1124_v11, 0  ;;  %v275_v16 = vsel %vm40_vm0, %v1129_v12, 0 }
   0xf   :  { %v1148_v17 = vld [vmem:[%s1282_s0] sm:$0xf]  ;;  %v1153_v18 = vld [vmem:[%s1282_s0 + $0x4] sm:$0xf]  ;;  %v38_v19 = vmul.bf16 1043676725, %v1124_v11 }
  0x10   :  { %v39_v20 = vmul.bf16 1043676725, %v1129_v12  ;;  %v321_v21 = vsel %vm40_vm0, %v1148_v17, 0  ;;  %v367_v22 = vsel %vm40_vm0, %v1153_v18, 0  ;;  %v1172_v23 = vld [vmem:[%s1282_s0 + $0x8] sm:$0xf] }
  0x11   :  { %v1177_v24 = vld [vmem:[%s1282_s0 + $0xc] sm:$0xf]  ;;  %v28_v25 = vmul.bf16 1043676725, %v1148_v17  ;;  %v29_v26 = vmul.bf16 1043676725, %v1153_v18 }
  0x12   :  { %940 = vmatmul.mubr.msk.bf16.vlgmr.msra.gmra.mxu0 %vm40_vm0, %v36_v13  ;;  %946 = vmatmul.mubr.msk.bf16.vlgmr.msra.gmra.mxu1 %vm40_vm0, %v37_v14  ;;  %v413_v27 = vsel %vm40_vm0, %v1172_v23, 0  ;;  %v459_v28 = vsel %vm40_vm0, %v1177_v24, 0  ;;  %v1196_v29 = vld [vmem:[%s1282_s0 + $0x10] sm:$0xf]  ;;  %v1201_v30 = vld [vmem:[%s1282_s0 + $0x14] sm:$0xf] }
  0x13   :  { %950 = vmatpush3.bf16.xpose.msra.mxu0 %v229_v15  ;;  %956 = vmatpush3.bf16.xpose.msra.mxu1 %v275_v16  ;;  %v30_v31 = vmul.bf16 1043676725, %v1172_v23  ;;  %v31_v32 = vmul.bf16 1043676725, %v1177_v24  ;;  %v505_v33 = vsel %vm40_vm0, %v1196_v29, 0  ;;  %v551_v34 = vsel %vm40_vm0, %v1201_v30, 0 }
  0x14   :  { %951 = vmatprep.mubr.msk.bf16.mxu0 %vm1050_vm1, %v1049_v2  ;;  %957 = vmatprep.mubr.msk.bf16.mxu1 %vm1050_vm1, %v1049_v2  ;;  %v32_v35 = vmul.bf16 1043676725, %v1196_v29  ;;  %v33_v36 = vmul.bf16 1043676725, %v1201_v30  ;;  %vm593_vm2 = vcmask 64512   ;;  %s1051_s0 = smov [#allocation2]  }
  0x15   :  { %961 = vmatprep.subr.bf16.mxu0 %v1049_v2  ;;  %967 = vmatprep.subr.bf16.mxu1 %v1049_v2  ;;  %s876_s8 = sshll.u32 %s1051_s0, 4  ;;  %vm840_vm3 = vcmask 1041409   ;;  %s877_s8 = int_to_ptr.vmem [resolvable:$true] %s876_s8 }
  0x16   :  { %s1027_s9 = scalar_lea.vmem %s877_s8, 768  ;;  %p1032_p1 = scmp.lt.s32.totalorder %s877_s8, %s877_s8 }
  0x17   :  { %p1028_p0 = scmp.ne.s32.totalorder %s877_s8, %s1027_s9  ;;  %p1033_p2 = scmp.lt.s32.totalorder %s1027_s9, %s1027_s9 }
  0x19   :  { %p1034_p3 = por %p1033_p2, %p1032_p1 }
  0x1a   :  { %952 = vmatmul.mubr.msk.bf16.vlgmr.msra.gmra.mxu0 %vm40_vm0, %v38_v19  ;;  %958 = vmatmul.mubr.msk.bf16.vlgmr.msra.gmra.mxu1 %vm40_vm0, %v39_v20 }
  0x1b   :  { %962 = vmatpush3.bf16.xpose.msra.mxu0 %v321_v21  ;;  %968 = vmatpush3.bf16.xpose.msra.mxu1 %v367_v22  ;;  %p1035_p4 = pnand %p1034_p3, %p1028_p0 }
  0x1c   :  { %963 = vmatprep.mubr.msk.bf16.mxu0 %vm1050_vm1, %v1049_v2  ;;  %969 = vmatprep.mubr.msk.bf16.mxu1 %vm1050_vm1, %v1049_v2 }
  0x1d   :  { %973 = vmatprep.subr.bf16.mxu0 %v1049_v2  ;;  %979 = vmatprep.subr.bf16.mxu1 %v1049_v2 }
  0x22   :  { %964 = vmatmul.mubr.msk.bf16.vlgmr.msra.gmra.mxu0 %vm40_vm0, %v28_v25  ;;  %970 = vmatmul.mubr.msk.bf16.vlgmr.msra.gmra.mxu1 %vm40_vm0, %v29_v26 }
  0x23   :  { %974 = vmatpush3.bf16.xpose.msra.mxu0 %v413_v27  ;;  %980 = vmatpush3.bf16.xpose.msra.mxu1 %v459_v28 }
  0x24   :  { %975 = vmatprep.mubr.msk.bf16.mxu0 %vm1050_vm1, %v1049_v2  ;;  %981 = vmatprep.mubr.msk.bf16.mxu1 %vm1050_vm1, %v1049_v2 }
  0x25   :  { %985 = vmatprep.subr.bf16.mxu0 %v1049_v2  ;;  %991 = vmatprep.subr.bf16.mxu1 %v1049_v2 }
  0x2a   :  { %976 = vmatmul.mubr.msk.bf16.vlgmr.msra.gmra.mxu0 %vm40_vm0, %v30_v31  ;;  %982 = vmatmul.mubr.msk.bf16.vlgmr.msra.gmra.mxu1 %vm40_vm0, %v31_v32 }
  0x2b   :  { %986 = vmatpush3.bf16.xpose.msra.mxu0 %v505_v33  ;;  %992 = vmatpush3.bf16.xpose.msra.mxu1 %v551_v34 }
  0x2c   :  { %987 = vmatprep.mubr.msk.bf16.mxu0 %vm1050_vm1, %v1049_v2  ;;  %993 = vmatprep.mubr.msk.bf16.mxu1 %vm1050_vm1, %v1049_v2 }
  0x32   :  { %988 = vmatmul.mubr.msk.bf16.vlgmr.msra.gmra.mxu0 %vm40_vm0, %v32_v35  ;;  %994 = vmatmul.mubr.msk.bf16.vlgmr.msra.gmra.mxu1 %vm40_vm0, %v33_v36 }
  0xca   :  { %v81_v37 = vpop.f32.mrf.mxu0  ;;  %v127_v38 = vpop.f32.mrf.mxu1 }
  0xcc   :  { %v929_v39 = vpop.f32.mrf.mxu0  ;;  %v935_v40 = vpop.f32.mrf.mxu1 }
  0xce   :  { %v84_v41 = vpop.f32.mrf.mxu0  ;;  %v130_v42 = vpop.f32.mrf.mxu1 }
  0xd0   :  { %v930_v43 = vpop.f32.mrf.mxu0  ;;  %v936_v44 = vpop.f32.mrf.mxu1 }
  0xd2   :  { %v173_v45 = vpop.f32.mrf.mxu0  ;;  %v219_v46 = vpop.f32.mrf.mxu1 }
  0xd4   :  { %v941_v47 = vpop.f32.mrf.mxu0  ;;  %v947_v48 = vpop.f32.mrf.mxu1 }
  0xd6   :  { %v176_v49 = vpop.f32.mrf.mxu0  ;;  %v222_v50 = vpop.f32.mrf.mxu1 }
  0xd8   :  { %v942_v51 = vpop.f32.mrf.mxu0  ;;  %v948_v52 = vpop.f32.mrf.mxu1 }
  0xda   :  { %v265_v53 = vpop.f32.mrf.mxu0  ;;  %v311_v54 = vpop.f32.mrf.mxu1 }
  0xdc   :  { %v953_v55 = vpop.f32.mrf.mxu0  ;;  %v959_v56 = vpop.f32.mrf.mxu1 }
  0xde   :  { %v268_v57 = vpop.f32.mrf.mxu0  ;;  %v314_v58 = vpop.f32.mrf.mxu1 }
  0xe0   :  { %v954_v59 = vpop.f32.mrf.mxu0  ;;  %v960_v60 = vpop.f32.mrf.mxu1 }
  0xe2   :  { %v357_v61 = vpop.f32.mrf.mxu0  ;;  %v403_v62 = vpop.f32.mrf.mxu1 }
  0xe3   :  { %v358_v63 = vadd.f32 %v357_v61, %v81_v37  ;;  %v404_v4 = vadd.f32 %v403_v62, %v127_v38 }
  0xe4   :  { %v965_v2 = vpop.f32.mrf.mxu0  ;;  %v971_v3 = vpop.f32.mrf.mxu1 }
  0xe5   :  { %v594_v7 = vsel %vm593_vm2, %v358_v63, -inf  ;;  %v597_v14 = vsel %vm593_vm2, %v404_v4, -inf }
  0xe6   :  { %v406_v8 = vpop.f32.mrf.mxu1  ;;  %595 = vmax.xlane.f32.xlu0 %v594_v7  ;;  %v360_v9 = vpop.f32.mrf.mxu0 }
  0xe8   :  { %v966_v10 = vpop.f32.mrf.mxu0  ;;  %v972_v13 = vpop.f32.mrf.mxu1 }
  0xea   :  { %v495_v15 = vpop.f32.mrf.mxu1  ;;  %598 = vmax.xlane.f32.xlu0 %v597_v14  ;;  %v449_v16 = vpop.f32.mrf.mxu0 }
  0xeb   :  { %v450_v19 = vadd.f32 %v449_v16, %v173_v45  ;;  %v496_v22 = vadd.f32 %v495_v15, %v219_v46 }
  0xec   :  { %v977_v20 = vpop.f32.mrf.mxu0  ;;  %v983_v21 = vpop.f32.mrf.mxu1 }
  0xed   :  { %v600_v25 = vsel %vm593_vm2, %v450_v19, -inf  ;;  %v603_v32 = vsel %vm593_vm2, %v496_v22, -inf }
  0xee   :  { %v498_v26 = vpop.f32.mrf.mxu1  ;;  %601 = vmax.xlane.f32.xlu1 %v600_v25  ;;  %v452_v27 = vpop.f32.mrf.mxu0 }
  0xf0   :  { %v978_v28 = vpop.f32.mrf.mxu0  ;;  %v984_v31 = vpop.f32.mrf.mxu1 }
  0xf2   :  { %v587_v33 = vpop.f32.mrf.mxu1  ;;  %604 = vmax.xlane.f32.xlu1 %v603_v32  ;;  %v541_v34 = vpop.f32.mrf.mxu0 }
  0xf3   :  { %v588_v35 = vadd.f32 %v587_v33, %v311_v54  ;;  %v542_v36 = vadd.f32 %v541_v34, %v265_v53 }
  0xf4   :  { %v989_v37 = vpop.f32.mrf.mxu0  ;;  %v995_v38 = vpop.f32.mrf.mxu1 }
  0xf5   :  { %v609_v39 = vsel %vm593_vm2, %v588_v35, -inf  ;;  %v606_v40 = vsel %vm593_vm2, %v542_v36, -inf }
  0xf6   :  { %v590_v41 = vpop.f32.mrf.mxu1  ;;  %610 = vmax.xlane.f32.xlu1 %v609_v39  ;;  %607 = vmax.xlane.f32.xlu0 %v606_v40  ;;  %v544_v42 = vpop.f32.mrf.mxu0 }
  0xf8   :  { %v990_v43 = vpop.f32.mrf.mxu0  ;;  %v996_v44 = vpop.f32.mrf.mxu1 }
 0x16f   :  { %v596_v45 = vpop.xlane.xlu0 %595 }
 0x170   :  { %v612_v46 = vsub.f32 %v358_v63, %v596_v45 }
 0x172   :  { %v618_v47 = vmul.f32 1.442695, %v612_v46 }
 0x173   :  { %v599_v48 = vpop.xlane.xlu0 %598 }
 0x174   :  { %1003 = vpow2.f32 %v618_v47  ;;  %v613_v49 = vsub.f32 %v404_v4, %v599_v48 }
 0x176   :  { %v620_v50 = vmul.f32 1.442695, %v613_v49 }
 0x177   :  { %v602_v51 = vpop.xlane.xlu1 %601 }
 0x178   :  { %1005 = vpow2.f32 %v620_v50  ;;  %v614_v52 = vsub.f32 %v450_v19, %v602_v51 }
 0x17a   :  { %v622_v53 = vmul.f32 1.442695, %v614_v52 }
 0x17b   :  { %v605_v54 = vpop.xlane.xlu1 %604 }
 0x17c   :  { %1007 = vpow2.f32 %v622_v53  ;;  %v615_v55 = vsub.f32 %v496_v22, %v605_v54 }
 0x17e   :  { %v624_v56 = vmul.f32 1.442695, %v615_v55 }
 0x17f   :  { %v611_v57 = vpop.xlane.xlu1 %610  ;;  %v608_v58 = vpop.xlane.xlu0 %607 }
 0x180   :  { %1009 = vpow2.f32 %v624_v56  ;;  %v617_v59 = vsub.f32 %v588_v35, %v611_v57  ;;  %v616_v60 = vsub.f32 %v542_v36, %v608_v58 }
 0x181   :  { %v1004_v61 = vpop.eup %1003 }
 0x182   :  { %v628_v62 = vmul.f32 1.442695, %v617_v59  ;;  %v626_v63 = vmul.f32 1.442695, %v616_v60  ;;  %v630_v2 = vsel %vm593_vm2, %v1004_v61, 0.0 }
 0x183   :  { %631 = vadd.xlane.f32.xlu0 %v630_v2 }
 0x184   :  { %1011 = vpow2.f32 %v628_v62 }
 0x185   :  { %v1006_v3 = vpop.eup %1005  ;;  %1013 = vpow2.f32 %v626_v63 }
 0x186   :  { %v633_v4 = vsel %vm593_vm2, %v1006_v3, 0.0 }
 0x187   :  { %634 = vadd.xlane.f32.xlu1 %v633_v4 }
 0x189   :  { %v1008_v7 = vpop.eup %1007 }
 0x18a   :  { %v636_v8 = vsel %vm593_vm2, %v1008_v7, 0.0 }
 0x18b   :  { %637 = vadd.xlane.f32.xlu0 %v636_v8 }
 0x18d   :  { %v1010_v9 = vpop.eup %1009 }
 0x18e   :  { %v639_v10 = vsel %vm593_vm2, %v1010_v9, 0.0 }
 0x18f   :  { %640 = vadd.xlane.f32.xlu1 %v639_v10 }
 0x191   :  { %v1012_v13 = vpop.eup %1011 }
 0x192   :  { %v1014_v14 = vpop.eup %1013  ;;  %v645_v15 = vsel %vm593_vm2, %v1012_v13, 0.0 }
 0x193   :  { %646 = vadd.xlane.f32.xlu1 %v645_v15  ;;  %v642_v16 = vsel %vm593_vm2, %v1014_v14, 0.0 }
 0x194   :  { %643 = vadd.xlane.f32.xlu0 %v642_v16 }
 0x20c   :  { %v632_v19 = vpop.xlane.xlu0 %631 }
 0x20d   :  { %1015 = vrcp.f32 %v632_v19 }
 0x210   :  { %v635_v20 = vpop.xlane.xlu1 %634 }
 0x211   :  { %1017 = vrcp.f32 %v635_v20 }
 0x214   :  { %v638_v21 = vpop.xlane.xlu0 %637 }
 0x215   :  { %1019 = vrcp.f32 %v638_v21 }
 0x218   :  { %v641_v22 = vpop.xlane.xlu1 %640 }
 0x219   :  { %1021 = vrcp.f32 %v641_v22 }
 0x21a   :  { %v1016_v25 = vpop.eup %1015 }
 0x21b   :  { %v654_v26 = vmul.f32 %v1016_v25, %v1004_v61 }
 0x21c   :  { %v647_v27 = vpop.xlane.xlu1 %646 }
 0x21d   :  { %1023 = vrcp.f32 %v647_v27  ;;  %v644_v28 = vpop.xlane.xlu0 %643  ;;  %v666_v31 = vsel %vm593_vm2, %v654_v26, 0.0  ;;  %660 = vst.msk [vmem:[#allocation2] sm:$0xff] %vm593_vm2, %v654_v26 }
 0x21e   :  { %v1018_v32 = vpop.eup %1017  ;;  %1025 = vrcp.f32 %v644_v28  ;;  %v667_v33 = vrot.slane %v666_v31, 4 }
 0x21f   :  { %v655_v34 = vmul.f32 %v1018_v32, %v1006_v3  ;;  %v780_v32 = vunpack.c.l.bf16 %v1078_v0 }
 0x220   :  { %v668_v35 = vadd.f32 %v667_v33, %v666_v31  ;;  %v726_v31 = vunpack.c.l.bf16 %v1148_v17 }
 0x221   :  { %v673_v36 = vsel %vm593_vm2, %v655_v34, 0.0  ;;  %661 = vst.msk [vmem:[#allocation2 + $0x8] sm:$0xff] %vm593_vm2, %v655_v34 }
 0x222   :  { %v1020_v37 = vpop.eup %1019  ;;  %v669_v38 = vrot.slane %v668_v35, 2  ;;  %v674_v39 = vrot.slane %v673_v36, 4 }
 0x223   :  { %v656_v40 = vmul.f32 %v1020_v37, %v1008_v7  ;;  %v781_v37 = vunpack.c.l.bf16 %v1083_v1 }
 0x224   :  { %v670_v41 = vadd.f32 %v669_v38, %v668_v35  ;;  %v675_v42 = vadd.f32 %v674_v39, %v673_v36  ;;  %v727_v36 = vunpack.c.l.bf16 %v1153_v18  ;;  %v728_v39 = vunpack.c.l.bf16 %v1172_v23 }
 0x225   :  { %v680_v43 = vsel %vm593_vm2, %v656_v40, 0.0  ;;  %662 = vst.msk [vmem:[#allocation2 + $0x10] sm:$0xff] %vm593_vm2, %v656_v40  ;;  %v782_v40 = vunpack.c.l.bf16 %v1100_v5  ;;  %v783_v23 = vunpack.c.l.bf16 %v1105_v6 }
 0x226   :  { %v1022_v44 = vpop.eup %1021  ;;  %v671_v45 = vrot.slane %v670_v41, 1  ;;  %v676_v46 = vrot.slane %v675_v42, 2  ;;  %v681_v47 = vrot.slane %v680_v43, 4 }
 0x227   :  { %v657_v48 = vmul.f32 %v1022_v44, %v1010_v9 }
 0x228   :  { %v672_v49 = vadd.f32 %v671_v45, %v670_v41  ;;  %v677_v50 = vadd.f32 %v676_v46, %v675_v42  ;;  %v682_v51 = vadd.f32 %v681_v47, %v680_v43 }
 0x229   :  { %663 = vst.msk [vmem:[#allocation2 + $0x18] sm:$0xff] %vm593_vm2, %v657_v48  ;;  %v687_v52 = vsel %vm593_vm2, %v657_v48, 0.0  ;;  %v729_v48 = vunpack.c.l.bf16 %v1177_v24 }
 0x22a   :  { %v1024_v53 = vpop.eup %1023  ;;  %709 = vbcast.lane.b32.xlu0 %v672_v49, 256  ;;  %v678_v54 = vrot.slane %v677_v50, 1  ;;  %v683_v55 = vrot.slane %v682_v51, 2  ;;  %v688_v56 = vrot.slane %v687_v52, 4 }
 0x22b   :  { %v1026_v57 = vpop.eup %1025  ;;  %v659_v58 = vmul.f32 %v1024_v53, %v1012_v13 }
 0x22c   :  { %v679_v59 = vadd.f32 %v678_v54, %v677_v50  ;;  %v684_v60 = vadd.f32 %v683_v55, %v682_v51  ;;  %v689_v61 = vadd.f32 %v688_v56, %v687_v52  ;;  %v658_v62 = vmul.f32 %v1026_v57, %v1014_v14 }
 0x22d   :  { %665 = vst.msk [vmem:[#allocation2 + $0x28] sm:$0xff] %vm593_vm2, %v659_v58  ;;  %v701_v63 = vsel %vm593_vm2, %v659_v58, 0.0  ;;  %v731_v55 = vunpack.c.l.bf16 %v1201_v30  ;;  %v785_v56 = vunpack.c.l.bf16 %v1129_v12  ;;  %v784_v30 = vunpack.c.l.bf16 %v1124_v11 }
 0x22e   :  { %712 = vbcast.lane.b32.xlu1 %v679_v59, 256  ;;  %v685_v2 = vrot.slane %v684_v60, 1  ;;  %v690_v3 = vrot.slane %v689_v61, 2  ;;  %v702_v4 = vrot.slane %v701_v63, 4  ;;  %v694_v7 = vsel %vm593_vm2, %v658_v62, 0.0  ;;  %664 = vst.msk [vmem:[#allocation2 + $0x20] sm:$0xff] %vm593_vm2, %v658_v62 }
 0x22f   :  { %v695_v8 = vrot.slane %v694_v7, 4 }
 0x230   :  { %v686_v9 = vadd.f32 %v685_v2, %v684_v60  ;;  %v691_v10 = vadd.f32 %v690_v3, %v689_v61  ;;  %v703_v13 = vadd.f32 %v702_v4, %v701_v63 }
 0x231   :  { %v696_v15 = vadd.f32 %v695_v8, %v694_v7  ;;  %v730_v8 = vunpack.c.l.bf16 %v1196_v29 }
 0x232   :  { %715 = vbcast.lane.b32.xlu1 %v686_v9, 256  ;;  %v692_v16 = vrot.slane %v691_v10, 1  ;;  %v704_v14 = vrot.slane %v703_v13, 2 }
 0x233   :  { %v697_v19 = vrot.slane %v696_v15, 2 }
 0x234   :  { %v693_v20 = vadd.f32 %v692_v16, %v691_v10  ;;  %v705_v21 = vadd.f32 %v704_v14, %v703_v13 }
 0x235   :  { %v698_v22 = vadd.f32 %v697_v19, %v696_v15 }
 0x236   :  { %718 = vbcast.lane.b32.xlu1 %v693_v20, 256  ;;  %v706_v25 = vrot.slane %v705_v21, 1 }
 0x237   :  { %v699_v26 = vrot.slane %v698_v22, 1 }
 0x238   :  { %v707_v27 = vadd.f32 %v706_v25, %v705_v21 }
 0x239   :  { %v700_v28 = vadd.f32 %v699_v26, %v698_v22 }
 0x23a   :  { %724 = vbcast.lane.b32.xlu1 %v707_v27, 256 }
 0x23b   :  { %721 = vbcast.lane.b32.xlu0 %v700_v28, 256 }
 0x29c   :  { %v710_v33 = vpop.permute.xlu0 %709 }
 0x29d   :  { %v732_v34 = vmul.f32 %v726_v31, %v710_v33  ;;  %v786_v35 = vmul.f32 %v780_v32, %v710_v33 }
 0x29f   :  { %v738_v41 = vsel %vm40_vm0, %v732_v34, 0.0  ;;  %v792_v42 = vsel %vm40_vm0, %v786_v35, 0.0 }
 0x2a0   :  { %v713_v38 = vpop.permute.xlu1 %712  ;;  %v739_v45 = vrot.slane %v738_v41, 4  ;;  %v793_v46 = vrot.slane %v792_v42, 4 }
 0x2a1   :  { %v733_v43 = vmul.f32 %v727_v36, %v713_v38  ;;  %v787_v17 = vmul.f32 %v781_v37, %v713_v38 }
 0x2a2   :  { %v740_v52 = vadd.f32 %v739_v45, %v738_v41  ;;  %v794_v53 = vadd.f32 %v793_v46, %v792_v42 }
 0x2a3   :  { %v745_v0 = vsel %vm40_vm0, %v733_v43, 0.0  ;;  %v799_v44 = vsel %vm40_vm0, %v787_v17, 0.0 }
 0x2a4   :  { %v716_v18 = vpop.permute.xlu1 %715  ;;  %v746_v5 = vrot.slane %v745_v0, 4  ;;  %v800_v49 = vrot.slane %v799_v44, 4  ;;  %v741_v12 = vrot.slane %v740_v52, 2  ;;  %v795_v9 = vrot.slane %v794_v53, 2 }
 0x2a5   :  { %v734_v47 = vmul.f32 %v728_v39, %v716_v18  ;;  %v788_v1 = vmul.f32 %v782_v40, %v716_v18 }
 0x2a6   :  { %v747_v24 = vadd.f32 %v746_v5, %v745_v0  ;;  %v801_v61 = vadd.f32 %v800_v49, %v799_v44  ;;  %v742_v11 = vadd.f32 %v741_v12, %v740_v52  ;;  %v796_v32 = vadd.f32 %v795_v9, %v794_v53 }
 0x2a7   :  { %v752_v50 = vsel %vm40_vm0, %v734_v47, 0.0  ;;  %v806_v51 = vsel %vm40_vm0, %v788_v1, 0.0 }
 0x2a8   :  { %v719_v54 = vpop.permute.xlu1 %718  ;;  %v753_v57 = vrot.slane %v752_v50, 4  ;;  %v807_v58 = vrot.slane %v806_v51, 4  ;;  %v748_v15 = vrot.slane %v747_v24, 2  ;;  %v802_v16 = vrot.slane %v801_v61, 2 }
 0x2a9   :  { %v735_v59 = vmul.f32 %v729_v48, %v719_v54  ;;  %v789_v60 = vmul.f32 %v783_v23, %v719_v54 }
 0x2aa   :  { %v754_v6 = vadd.f32 %v753_v57, %v752_v50  ;;  %v808_v62 = vadd.f32 %v807_v58, %v806_v51  ;;  %v749_v35 = vadd.f32 %v748_v15, %v747_v24  ;;  %v803_v36 = vadd.f32 %v802_v16, %v801_v61 }
 0x2ab   :  { %v759_v63 = vsel %vm40_vm0, %v735_v59, 0.0  ;;  %v813_v2 = vsel %vm40_vm0, %v789_v60, 0.0 }
 0x2ac   :  { %v760_v3 = vrot.slane %v759_v63, 4  ;;  %v814_v4 = vrot.slane %v813_v2, 4  ;;  %v725_v7 = vpop.permute.xlu1 %724  ;;  %v755_v21 = vrot.slane %v754_v6, 2  ;;  %v809_v22 = vrot.slane %v808_v62, 2 }
 0x2ad   :  { %v737_v10 = vmul.f32 %v731_v55, %v725_v7  ;;  %v791_v13 = vmul.f32 %v785_v56, %v725_v7  ;;  %v722_v20 = vpop.permute.xlu0 %721  ;;  %v750_v18 = vrot.slane %v749_v35, 1  ;;  %v804_v47 = vrot.slane %v803_v36, 1 }
 0x2ae   :  { %v761_v14 = vadd.f32 %v760_v3, %v759_v63  ;;  %v815_v19 = vadd.f32 %v814_v4, %v813_v2  ;;  %v736_v33 = vmul.f32 %v730_v8, %v722_v20  ;;  %v790_v34 = vmul.f32 %v784_v30, %v722_v20 }
 0x2af   :  { %v773_v25 = vsel %vm40_vm0, %v737_v10, 0.0  ;;  %v827_v26 = vsel %vm40_vm0, %v791_v13, 0.0  ;;  %v756_v39 = vadd.f32 %v755_v21, %v754_v6  ;;  %v810_v40 = vadd.f32 %v809_v22, %v808_v62 }
 0x2b0   :  { %v762_v27 = vrot.slane %v761_v14, 2  ;;  %v816_v28 = vrot.slane %v815_v19, 2  ;;  %v774_v29 = vrot.slane %v773_v25, 4  ;;  %v828_v31 = vrot.slane %v827_v26, 4 }
 0x2b1   :  { %v766_v41 = vsel %vm40_vm0, %v736_v33, 0.0  ;;  %v820_v42 = vsel %vm40_vm0, %v790_v34, 0.0  ;;  %v757_v23 = vrot.slane %v756_v39, 1  ;;  %v811_v5 = vrot.slane %v810_v40, 1 }
 0x2b2   :  { %v775_v37 = vadd.f32 %v774_v29, %v773_v25  ;;  %v829_v38 = vadd.f32 %v828_v31, %v827_v26  ;;  %v763_v43 = vadd.f32 %v762_v27, %v761_v14  ;;  %v817_v17 = vadd.f32 %v816_v28, %v815_v19 }
 0x2b3   :  { %v767_v45 = vrot.slane %v766_v41, 4  ;;  %v821_v46 = vrot.slane %v820_v42, 4 }
 0x2b4   :  { %v776_v0 = vrot.slane %v775_v37, 2  ;;  %v830_v44 = vrot.slane %v829_v38, 2 }
 0x2b5   :  { %v768_v49 = vadd.f32 %v767_v45, %v766_v41  ;;  %v822_v50 = vadd.f32 %v821_v46, %v820_v42 }
 0x2b6   :  { %v777_v1 = vadd.f32 %v776_v0, %v775_v37  ;;  %v831_v48 = vadd.f32 %v830_v44, %v829_v38 }
 0x2b7   :  { %1038 = shalt.err (!%p1035_p4)
}
 0x2b8   :  { %s1052_s10 = smov 128   ;;  %s1053_s11 = smov 8   ;;  %v743_v51 = vrot.slane %v742_v11, 1  ;;  %v797_v52 = vrot.slane %v796_v32, 1  ;;  %v764_v53 = vrot.slane %v763_v43, 1  ;;  %v818_v54 = vrot.slane %v817_v17, 1 }
 0x2b9   :  { %882 = dma.vmem_to_hbm [thread:$0]  %s877_s8, 768, %s1285_s3, [#allocation3], %s1052_s10, %s1052_s10, %s1053_s11   ;;  %v769_v55 = vrot.slane %v768_v49, 2  ;;  %v823_v56 = vrot.slane %v822_v50, 2  ;;  %vm842_vm4 = vcmask 1042434   ;;  %vm844_vm5 = vcmask 1043459  }
 0x2ba   :  { %v751_v57 = vadd.f32 %v750_v18, %v749_v35  ;;  %v805_v58 = vadd.f32 %v804_v47, %v803_v36  ;;  %v778_v59 = vrot.slane %v777_v1, 1  ;;  %v832_v60 = vrot.slane %v831_v48, 1  ;;  %s1054_s3 = smov 16  }
 0x2bb   :  { %v758_v24 = vadd.f32 %v757_v23, %v756_v39  ;;  %v812_v61 = vadd.f32 %v811_v5, %v810_v40  ;;  %v770_v6 = vadd.f32 %v769_v55, %v768_v49  ;;  %v824_v62 = vadd.f32 %v823_v56, %v822_v50 }
 0x2bc   :  { %v744_v63 = vadd.f32 %v743_v51, %v742_v11  ;;  %v798_v2 = vadd.f32 %v797_v52, %v796_v32  ;;  %v765_v3 = vadd.f32 %v764_v53, %v763_v43  ;;  %v819_v4 = vadd.f32 %v818_v54, %v817_v17 }
 0x2bd   :  { %v771_v7 = vrot.slane %v770_v6, 1  ;;  %v825_v8 = vrot.slane %v824_v62, 1  ;;  %vm846_vm6 = vcmask 1044484   ;;  %vm848_vm7 = vcmask 1045509  }
 0x2be   :  { %v779_v30 = vadd.f32 %v778_v59, %v777_v1  ;;  %v833_v12 = vadd.f32 %v832_v60, %v831_v48  ;;  %v859_v9 = vsel %vm840_vm3, %v805_v58, %v798_v2  ;;  %v841_v10 = vsel %vm840_vm3, %v751_v57, %v744_v63 }
 0x2bf   :  { %v772_v13 = vadd.f32 %v771_v7, %v770_v6  ;;  %v826_v15 = vadd.f32 %v825_v8, %v824_v62  ;;  %v860_v16 = vsel %vm842_vm4, %v812_v61, %v859_v9  ;;  %v843_v14 = vsel %vm842_vm4, %v758_v24, %v841_v10 }
 0x2c0   :  { %v861_v19 = vsel %vm844_vm5, %v819_v4, %v860_v16  ;;  %v845_v20 = vsel %vm844_vm5, %v765_v3, %v843_v14  ;;  %vm851_vm8 = vcmask 128000   ;;  %vm867_vm9 = vcmask 259200  }
 0x2c1   :  { %v862_v21 = vsel %vm846_vm6, %v826_v15, %v861_v19  ;;  %v847_v22 = vsel %vm846_vm6, %v772_v13, %v845_v20 }
 0x2c2   :  { %v863_v25 = vsel %vm848_vm7, %v833_v12, %v862_v21  ;;  %v849_v26 = vsel %vm848_vm7, %v779_v30, %v847_v22 }
 0x2c3   :  { %864 = vrot.lane.b32.xlu0 %v863_v25, %s1054_s3  ;;  %852 = vst.msk [vmem:[%s1284_s2] sm:$0x3f] %vm851_vm8, %v849_v26 }
 0x335   :  { %v865_v27 = vpop.permute.xlu0 %864 }
 0x336   :  { %868 = vst.msk [vmem:[%s1284_s2] sm:$0x3f] %vm867_vm9, %v865_v27 }
 0x337   :  { %1047 = dma.done.wait [#allocation3], 768  }
 0x338   :  { %1048 = vsyncadd [#allocation3], 4294966528 }
 0x339   :  { %888 = vsyncpa [#allocation3], 1 }

// kernel: word_attention_v2_forward.3
= control target key start
LH: loop header
LB: loop body
LE: loop exit
PB: predicated region body
PF: predicated region fallthrough
CT: control target
= control target key end

     0   :  { %vm59_vm0 = vcmask 259072   ;;  %v1682_v0 = vmov 0.0   ;;  %vm1683_vm1 = vmmov 0   ;;  %s1684_s26 = smov 64   ;;  %vm75_vm2 = vcmask 261120   ;;  %s1686_s28 = smov 48   ;;  %s2104_s2 = inlined_call_operand.vmem [shape: f32[32,96], index: 2, kind: input, shape index: {}]   ;;  %s2105_s3 = inlined_call_operand.vmem [shape: f32[1,32], index: 3, kind: input, shape index: {}]   ;;  %s2106_s0 = inlined_call_operand.vmem [shape: f32[8,6,48], index: 0, kind: input, shape index: {}]   ;;  %s2107_s1 = inlined_call_operand.vmem [shape: f32[8,6,48], index: 1, kind: input, shape index: {}]   ;;  %s2108_s4 = inlined_call_operand.vmem [shape: f32[8,6,16], index: 4, kind: output, shape index: {0}]   ;;  %s2109_s5 = inlined_call_operand.vmem [shape: f32[8,6,16], index: 5, kind: output, shape index: {1}]  }
   0x1   :  { %1490 = vmatprep.subr.mxu0 %v1682_v0  ;;  %v1724_v1 = vld [vmem:[%s2104_s2 + $0x18] sm:$0xff]  ;;  %v1729_v2 = vld [vmem:[%s2104_s2 + $0x10] sm:$0xff]  ;;  %1498 = vmatprep.mubr.msk.f32.mxu0 %vm1683_vm1, %v1682_v0  ;;  %60 = vst.msk [vmem:[#allocation2] sm:$0x3f] %vm59_vm0, %v1682_v0  ;;  %v1397_v3 = vld [vmem:[%s2105_s3] ss:$0 sm:$0xff] }
   0x2   :  { %1491 = vmatpush3.msra.mxu0 %v1724_v1  ;;  %1501 = vmatprep.subr.mxu1 %v1682_v0  ;;  %v1743_v4 = vld [vmem:[%s2104_s2 + $0x8] sm:$0xff]  ;;  %v1752_v5 = vld [vmem:[%s2104_s2] sm:$0xff]  ;;  %s1685_s2 = smov 96   ;;  %v1398_v16 = vld [vmem:[%s2107_s1 + $0x38] sm:$0x3f]  ;;  %s1687_s8 = smov 32  }
   0x3   :  { %1492 = vmatprep.subr.mxu0 %v1682_v0  ;;  %167 = vrot.lane.b32.xlu0 %v1397_v3, %s1684_s26  ;;  %v71_v11 = vld [vmem:[%s2106_s0] sm:$0x3f]  ;;  %s1688_s9 = smov 112   ;;  %s1689_s10 = smov 16   ;;  %vm222_vm3 = vcmask 128000   ;;  %vm228_vm4 = vcmask 259200  }
   0x4   :  { %1493 = vmatpush3.msra.mxu0 %v1729_v2  ;;  %1502 = vmatpush3.msra.mxu1 %v1724_v1  ;;  %v1403_v51 = vld [vmem:[%s2106_s0 + $0x8] sm:$0x3f]  ;;  %v1404_v56 = vld [vmem:[%s2107_s1 + $0x30] sm:$0x3f] }
   0x5   :  { %1494 = vmatprep.subr.mxu0 %v1682_v0  ;;  %1503 = vmatprep.subr.mxu1 %v1682_v0 }
   0x6   :  { %1495 = vmatpush3.msra.mxu0 %v1743_v4  ;;  %1504 = vmatpush3.msra.mxu1 %v1729_v2 }
   0x7   :  { %1496 = vmatprep.subr.mxu0 %v1682_v0  ;;  %1505 = vmatprep.subr.mxu1 %v1682_v0 }
   0x8   :  { %1497 = vmatpush3.msra.mxu0 %v1752_v5  ;;  %v1760_v6 = vld [vmem:[#allocation2] sm:$0x3f]  ;;  %1506 = vmatpush3.msra.mxu1 %v1743_v4 }
   0x9   :  { %1499 = vmatmul.mubr.msk.f32.vlgmr.msra.gmra.mxu0 %vm75_vm2, %v1760_v6  ;;  %1507 = vmatprep.subr.mxu1 %v1682_v0 }
   0xa   :  { %1508 = vmatpush3.msra.mxu1 %v1752_v5  ;;  %1509 = vmatprep.mubr.msk.f32.mxu1 %vm1683_vm1, %v1682_v0 }
   0xb   :  { %1512 = vmatprep.subr.mxu0 %v1682_v0  ;;  %1520 = vmatprep.mubr.msk.f32.mxu0 %vm1683_vm1, %v1682_v0 }
   0xc   :  { %1513 = vmatpush3.msra.mxu0 %v1724_v1  ;;  %1523 = vmatprep.subr.mxu1 %v1682_v0 }
   0xd   :  { %1514 = vmatprep.subr.mxu0 %v1682_v0 }
   0xe   :  { %1515 = vmatpush3.msra.mxu0 %v1729_v2 }
   0xf   :  { %1516 = vmatprep.subr.mxu0 %v1682_v0 }
  0x10   :  { %1517 = vmatpush3.msra.mxu0 %v1743_v4 }
  0x11   :  { %1518 = vmatprep.subr.mxu0 %v1682_v0 }
  0x12   :  { %1519 = vmatpush3.msra.mxu0 %v1752_v5 }
  0x13   :  { %1534 = vmatprep.subr.mxu0 %v1682_v0 }
  0x75   :  { %v1781_v7 = vpop.permute.xlu0 %167 }
  0xc9   :  { %v145_v8 = vpop.f32.mrf.mxu0 }
  0xca   :  { %v170_v9 = vadd.f32 %v1781_v7, %v145_v8  ;;  %157 = vrot.lane.b32.xlu1 %v145_v8, %s1685_s2  ;;  %v149_v12 = vadd.f32 %v145_v8, %v71_v11 }
  0xcb   :  { %v1500_v10 = vpop.f32.mrf.mxu0 }
  0xcc   :  { %172 = vrot.lane.b32.xlu0 %v170_v9, %s1684_s26  ;;  %v1400_v13 = vmul.f32 -1.442695, %v149_v12 }
  0xce   :  { %182 = vrot.lane.b32.xlu1 %v170_v9, %s1686_s28  ;;  %1586 = vpow2.f32 %v1400_v13 }
  0xdb   :  { %v1587_v14 = vpop.eup %1586 }
  0xdc   :  { %v153_v15 = vadd.f32 1.0, %v1587_v14 }
  0xde   :  { %1588 = vrcp.f32 %v153_v15 }
  0xeb   :  { %v1589_v19 = vpop.eup %1588 }
 0x13c   :  { %v158_v17 = vpop.permute.xlu1 %157 }
 0x13d   :  { %v160_v18 = vadd.f32 %v1398_v16, %v158_v17 }
 0x13e   :  { %v173_v20 = vpop.permute.xlu0 %172 }
 0x13f   :  { %v1401_v21 = vmul.f32 -1.442695, %v160_v18  ;;  %v175_v22 = vmul.f32 %v1589_v19, %v173_v20 }
 0x140   :  { %v183_v26 = vpop.permute.xlu1 %182 }
 0x141   :  { %1590 = vpow2.f32 %v1401_v21  ;;  %177 = vrot.lane.b32.xlu0 %v175_v22, %s1687_s8 }
 0x14e   :  { %v1591_v23 = vpop.eup %1590 }
 0x14f   :  { %v164_v24 = vadd.f32 1.0, %v1591_v23 }
 0x151   :  { %1592 = vrcp.f32 %v164_v24 }
 0x15e   :  { %v1593_v25 = vpop.eup %1592 }
 0x15f   :  { %v185_v27 = vmul.f32 %v1593_v25, %v183_v26 }
 0x161   :  { %187 = vrot.lane.b32.xlu1 %v185_v27, %s1687_s8 }
 0x1b3   :  { %v178_v28 = vpop.permute.xlu0 %177 }
 0x1b4   :  { %v180_v29 = vadd.f32 %v178_v28, %v71_v11 }
 0x1b6   :  { %1594 = vtanh.f32 %v180_v29 }
 0x1c3   :  { %v1595_v30 = vpop.eup %1594 }
 0x1c4   :  { %193 = vrot.lane.b32.xlu0 %v1595_v30, %s1685_s2 }
 0x1d3   :  { %v188_v31 = vpop.permute.xlu1 %187 }
 0x1d4   :  { %v190_v32 = vadd.f32 %v1398_v16, %v188_v31 }
 0x1d6   :  { %1596 = vtanh.f32 %v190_v32 }
 0x1e3   :  { %v1597_v33 = vpop.eup %1596 }
 0x1e4   :  { %208 = vrot.lane.b32.xlu1 %v1597_v33, %s1688_s9 }
 0x236   :  { %v194_v34 = vpop.permute.xlu0 %193 }
 0x237   :  { %v196_v35 = vsub.f32 %v1760_v6, %v194_v34 }
 0x239   :  { %198 = vrot.lane.b32.xlu0 %v196_v35, %s1689_s10 }
 0x256   :  { %v209_v36 = vpop.permute.xlu1 %208 }
 0x257   :  { %v211_v37 = vsub.f32 %v1760_v6, %v209_v36 }
 0x259   :  { %v212_v38 = vmul.f32 %v1593_v25, %v211_v37 }
 0x25b   :  { %214 = vrot.lane.b32.xlu0 %v212_v38, %s1689_s10  ;;  %v1411_v38 = vld [vmem:[%s2107_s1 + $0x28] sm:$0x3f] }
 0x2ab   :  { %v199_v39 = vpop.permute.xlu0 %198 }
 0x2ac   :  { %v201_v40 = vmul.f32 %v1589_v19, %v199_v39 }
 0x2ae   :  { %203 = vrot.lane.b32.xlu1 %v201_v40, %s1689_s10 }
 0x2cd   :  { %v215_v41 = vpop.permute.xlu0 %214 }
 0x2ce   :  { %v1802_v42 = vadd.f32 %v1597_v33, %v215_v41  ;;  %v1410_v33 = vld [vmem:[%s2106_s0 + $0x10] sm:$0x3f] }
 0x2d0   :  { %225 = vrot.lane.b32.xlu0 %v1802_v42, %s1688_s9 }
 0x320   :  { %v204_v43 = vpop.permute.xlu1 %203 }
 0x321   :  { %v206_v44 = vadd.f32 %v1595_v30, %v204_v43 }
 0x323   :  { %219 = vrot.lane.b32.xlu1 %v206_v44, %s1685_s2 }
 0x342   :  { %v226_v46 = vpop.permute.xlu0 %225 }
 0x395   :  { %v220_v45 = vpop.permute.xlu1 %219 }
 0x396   :  { %223 = vst.msk [vmem:[#allocation2] sm:$0x3f] %vm222_vm3, %v220_v45  ;;  %230 = vst.msk [vmem:[%s2108_s4] sm:$0x3f] %vm222_vm3, %v220_v45 }
 0x397   :  { %229 = vst.msk [vmem:[#allocation2] sm:$0x3f] %vm228_vm4, %v226_v46 }
 0x39e   :  { %v240_v47 = vld [vmem:[#allocation2] sm:$0x3f] }
 0x39f   :  { %1510 = vmatmul.mubr.msk.f32.vlgmr.msra.gmra.mxu1 %vm75_vm2, %v240_v47 }
 0x3a0   :  { %1524 = vmatpush3.msra.mxu1 %v1724_v1  ;;  %1531 = vmatprep.mubr.msk.f32.mxu1 %vm1683_vm1, %v1682_v0 }
 0x3a1   :  { %1525 = vmatprep.subr.mxu1 %v1682_v0 }
 0x3a2   :  { %1526 = vmatpush3.msra.mxu1 %v1729_v2 }
 0x3a3   :  { %1527 = vmatprep.subr.mxu1 %v1682_v0 }
 0x3a4   :  { %1528 = vmatpush3.msra.mxu1 %v1743_v4 }
 0x3a5   :  { %1529 = vmatprep.subr.mxu1 %v1682_v0 }
 0x3a6   :  { %1530 = vmatpush3.msra.mxu1 %v1752_v5 }
 0x3a7   :  { %1545 = vmatprep.subr.mxu1 %v1682_v0 }
 0x45f   :  { %v310_v48 = vpop.f32.mrf.mxu1 }
 0x460   :  { %v332_v49 = vadd.f32 %v310_v48, %v1781_v7  ;;  %322 = vrot.lane.b32.xlu0 %v310_v48, %s1685_s2  ;;  %v314_v52 = vadd.f32 %v1403_v51, %v310_v48 }
 0x461   :  { %v1511_v50 = vpop.f32.mrf.mxu1 }
 0x462   :  { %334 = vrot.lane.b32.xlu1 %v332_v49, %s1684_s26  ;;  %v1406_v53 = vmul.f32 -1.442695, %v314_v52 }
 0x464   :  { %1598 = vpow2.f32 %v1406_v53 }
 0x466   :  { %344 = vrot.lane.b32.xlu1 %v332_v49, %s1686_s28 }
 0x471   :  { %v1599_v54 = vpop.eup %1598 }
 0x472   :  { %v318_v55 = vadd.f32 1.0, %v1599_v54 }
 0x474   :  { %1600 = vrcp.f32 %v318_v55 }
 0x481   :  { %v1601_v59 = vpop.eup %1600 }
 0x4d2   :  { %v323_v57 = vpop.permute.xlu0 %322 }
 0x4d3   :  { %v325_v58 = vadd.f32 %v1404_v56, %v323_v57 }
 0x4d4   :  { %v335_v60 = vpop.permute.xlu1 %334 }
 0x4d5   :  { %v1407_v61 = vmul.f32 -1.442695, %v325_v58  ;;  %v337_v62 = vmul.f32 %v1601_v59, %v335_v60 }
 0x4d7   :  { %1602 = vpow2.f32 %v1407_v61  ;;  %339 = vrot.lane.b32.xlu0 %v337_v62, %s1687_s8 }
 0x4d8   :  { %v345_v8 = vpop.permute.xlu1 %344 }
 0x4e4   :  { %v1603_v63 = vpop.eup %1602 }
 0x4e5   :  { %v329_v3 = vadd.f32 1.0, %v1603_v63 }
 0x4e7   :  { %1604 = vrcp.f32 %v329_v3 }
 0x4f4   :  { %v1605_v6 = vpop.eup %1604 }
 0x4f5   :  { %v347_v9 = vmul.f32 %v1605_v6, %v345_v8 }
 0x4f7   :  { %349 = vrot.lane.b32.xlu1 %v347_v9, %s1687_s8 }
 0x549   :  { %v340_v10 = vpop.permute.xlu0 %339 }
 0x54a   :  { %v342_v11 = vadd.f32 %v1403_v51, %v340_v10 }
 0x54c   :  { %1606 = vtanh.f32 %v342_v11 }
 0x559   :  { %v1607_v12 = vpop.eup %1606 }
 0x55a   :  { %355 = vrot.lane.b32.xlu0 %v1607_v12, %s1685_s2 }
 0x569   :  { %v350_v13 = vpop.permute.xlu1 %349 }
 0x56a   :  { %v352_v14 = vadd.f32 %v1404_v56, %v350_v13 }
 0x56c   :  { %1608 = vtanh.f32 %v352_v14 }
 0x579   :  { %v1609_v15 = vpop.eup %1608 }
 0x57a   :  { %370 = vrot.lane.b32.xlu1 %v1609_v15, %s1688_s9 }
 0x5cc   :  { %v356_v16 = vpop.permute.xlu0 %355 }
 0x5cd   :  { %v358_v17 = vsub.f32 %v240_v47, %v356_v16  ;;  %v1417_v16 = vld [vmem:[%s2106_s0 + $0x18] sm:$0x3f] }
 0x5cf   :  { %360 = vrot.lane.b32.xlu0 %v358_v17, %s1689_s10 }
 0x5ec   :  { %v371_v18 = vpop.permute.xlu1 %370 }
 0x5ed   :  { %v373_v19 = vsub.f32 %v240_v47, %v371_v18 }
 0x5ef   :  { %v374_v20 = vmul.f32 %v1605_v6, %v373_v19 }
 0x5f1   :  { %376 = vrot.lane.b32.xlu0 %v374_v20, %s1689_s10 }
 0x641   :  { %v361_v21 = vpop.permute.xlu0 %360 }
 0x642   :  { %v363_v22 = vmul.f32 %v1601_v59, %v361_v21  ;;  %v1418_v21 = vld [vmem:[%s2107_s1 + $0x20] sm:$0x3f] }
 0x644   :  { %365 = vrot.lane.b32.xlu1 %v363_v22, %s1689_s10 }
 0x663   :  { %v377_v23 = vpop.permute.xlu0 %376 }
 0x664   :  { %v1841_v24 = vadd.f32 %v1609_v15, %v377_v23 }
 0x666   :  { %386 = vrot.lane.b32.xlu0 %v1841_v24, %s1688_s9 }
 0x6b6   :  { %v366_v25 = vpop.permute.xlu1 %365 }
 0x6b7   :  { %v368_v26 = vadd.f32 %v1607_v12, %v366_v25 }
 0x6b9   :  { %381 = vrot.lane.b32.xlu1 %v368_v26, %s1685_s2 }
 0x6d8   :  { %v387_v28 = vpop.permute.xlu0 %386 }
 0x72b   :  { %v382_v27 = vpop.permute.xlu1 %381 }
 0x72c   :  { %384 = vst.msk [vmem:[#allocation2] sm:$0x3f] %vm222_vm3, %v382_v27  ;;  %1408 = vst.msk [vmem:[%s2108_s4 + $0x8] sm:$0x3f] %vm222_vm3, %v382_v27 }
 0x72d   :  { %389 = vst.msk [vmem:[#allocation2] sm:$0x3f] %vm228_vm4, %v387_v28 }
 0x734   :  { %v401_v29 = vld [vmem:[#allocation2] sm:$0x3f] }
 0x735   :  { %1521 = vmatmul.mubr.msk.f32.vlgmr.msra.gmra.mxu0 %vm75_vm2, %v401_v29 }
 0x736   :  { %1535 = vmatpush3.msra.mxu0 %v1724_v1  ;;  %1542 = vmatprep.mubr.msk.f32.mxu0 %vm1683_vm1, %v1682_v0 }
 0x737   :  { %1536 = vmatprep.subr.mxu0 %v1682_v0 }
 0x738   :  { %1537 = vmatpush3.msra.mxu0 %v1729_v2 }
 0x739   :  { %1538 = vmatprep.subr.mxu0 %v1682_v0 }
 0x73a   :  { %1539 = vmatpush3.msra.mxu0 %v1743_v4 }
 0x73b   :  { %1540 = vmatprep.subr.mxu0 %v1682_v0 }
 0x73c   :  { %1541 = vmatpush3.msra.mxu0 %v1752_v5 }
 0x73d   :  { %1556 = vmatprep.subr.mxu0 %v1682_v0 }
 0x7f5   :  { %v471_v30 = vpop.f32.mrf.mxu0 }
 0x7f6   :  { %v493_v31 = vadd.f32 %v471_v30, %v1781_v7  ;;  %483 = vrot.lane.b32.xlu0 %v471_v30, %s1685_s2  ;;  %v475_v34 = vadd.f32 %v1410_v33, %v471_v30 }
 0x7f7   :  { %v1522_v32 = vpop.f32.mrf.mxu0 }
 0x7f8   :  { %495 = vrot.lane.b32.xlu1 %v493_v31, %s1684_s26  ;;  %v1413_v35 = vmul.f32 -1.442695, %v475_v34 }
 0x7fa   :  { %1610 = vpow2.f32 %v1413_v35 }
 0x7fc   :  { %505 = vrot.lane.b32.xlu1 %v493_v31, %s1686_s28 }
 0x807   :  { %v1611_v36 = vpop.eup %1610 }
 0x808   :  { %v479_v37 = vadd.f32 1.0, %v1611_v36 }
 0x80a   :  { %1612 = vrcp.f32 %v479_v37 }
 0x817   :  { %v1613_v41 = vpop.eup %1612 }
 0x868   :  { %v484_v39 = vpop.permute.xlu0 %483 }
 0x869   :  { %v486_v40 = vadd.f32 %v1411_v38, %v484_v39 }
 0x86a   :  { %v496_v43 = vpop.permute.xlu1 %495 }
 0x86b   :  { %v1414_v44 = vmul.f32 -1.442695, %v486_v40  ;;  %v498_v45 = vmul.f32 %v1613_v41, %v496_v43 }
 0x86d   :  { %1614 = vpow2.f32 %v1414_v44  ;;  %500 = vrot.lane.b32.xlu0 %v498_v45, %s1687_s8 }
 0x86e   :  { %v506_v49 = vpop.permute.xlu1 %505 }
 0x87a   :  { %v1615_v46 = vpop.eup %1614 }
 0x87b   :  { %v490_v47 = vadd.f32 1.0, %v1615_v46 }
 0x87d   :  { %1616 = vrcp.f32 %v490_v47 }
 0x88a   :  { %v1617_v48 = vpop.eup %1616 }
 0x88b   :  { %v508_v50 = vmul.f32 %v1617_v48, %v506_v49 }
 0x88d   :  { %510 = vrot.lane.b32.xlu1 %v508_v50, %s1687_s8 }
 0x8df   :  { %v501_v51 = vpop.permute.xlu0 %500 }
 0x8e0   :  { %v503_v52 = vadd.f32 %v1410_v33, %v501_v51 }
 0x8e2   :  { %1618 = vtanh.f32 %v503_v52 }
 0x8ef   :  { %v1619_v53 = vpop.eup %1618 }
 0x8f0   :  { %516 = vrot.lane.b32.xlu0 %v1619_v53, %s1685_s2 }
 0x8ff   :  { %v511_v54 = vpop.permute.xlu1 %510 }
 0x900   :  { %v513_v55 = vadd.f32 %v1411_v38, %v511_v54 }
 0x902   :  { %1620 = vtanh.f32 %v513_v55 }
 0x90f   :  { %v1621_v56 = vpop.eup %1620 }
 0x910   :  { %531 = vrot.lane.b32.xlu1 %v1621_v56, %s1688_s9 }
 0x962   :  { %v517_v57 = vpop.permute.xlu0 %516 }
 0x963   :  { %v519_v58 = vsub.f32 %v401_v29, %v517_v57 }
 0x965   :  { %521 = vrot.lane.b32.xlu0 %v519_v58, %s1689_s10  ;;  %v1424_v58 = vld [vmem:[%s2106_s0 + $0x20] sm:$0x3f] }
 0x982   :  { %v532_v59 = vpop.permute.xlu1 %531 }
 0x983   :  { %v534_v60 = vsub.f32 %v401_v29, %v532_v59 }
 0x985   :  { %v535_v61 = vmul.f32 %v1617_v48, %v534_v60 }
 0x987   :  { %537 = vrot.lane.b32.xlu0 %v535_v61, %s1689_s10 }
 0x9d7   :  { %v522_v62 = vpop.permute.xlu0 %521 }
 0x9d8   :  { %v524_v63 = vmul.f32 %v1613_v41, %v522_v62 }
 0x9da   :  { %526 = vrot.lane.b32.xlu1 %v524_v63, %s1689_s10  ;;  %v1425_v63 = vld [vmem:[%s2107_s1 + $0x18] sm:$0x3f] }
 0x9f9   :  { %v538_v3 = vpop.permute.xlu0 %537 }
 0x9fa   :  { %v1880_v6 = vadd.f32 %v1621_v56, %v538_v3 }
 0x9fc   :  { %547 = vrot.lane.b32.xlu0 %v1880_v6, %s1688_s9 }
 0xa4c   :  { %v527_v8 = vpop.permute.xlu1 %526 }
 0xa4d   :  { %v529_v9 = vadd.f32 %v1619_v53, %v527_v8 }
 0xa4f   :  { %542 = vrot.lane.b32.xlu1 %v529_v9, %s1685_s2 }
 0xa6e   :  { %v548_v11 = vpop.permute.xlu0 %547 }
 0xac1   :  { %v543_v10 = vpop.permute.xlu1 %542 }
 0xac2   :  { %545 = vst.msk [vmem:[#allocation2] sm:$0x3f] %vm222_vm3, %v543_v10  ;;  %1415 = vst.msk [vmem:[%s2108_s4 + $0x10] sm:$0x3f] %vm222_vm3, %v543_v10 }
 0xac3   :  { %550 = vst.msk [vmem:[#allocation2] sm:$0x3f] %vm228_vm4, %v548_v11 }
 0xaca   :  { %v562_v12 = vld [vmem:[#allocation2] sm:$0x3f] }
 0xacb   :  { %1532 = vmatmul.mubr.msk.f32.vlgmr.msra.gmra.mxu1 %vm75_vm2, %v562_v12 }
 0xacc   :  { %1546 = vmatpush3.msra.mxu1 %v1724_v1  ;;  %1553 = vmatprep.mubr.msk.f32.mxu1 %vm1683_vm1, %v1682_v0 }
 0xacd   :  { %1547 = vmatprep.subr.mxu1 %v1682_v0 }
 0xace   :  { %1548 = vmatpush3.msra.mxu1 %v1729_v2 }
 0xacf   :  { %1549 = vmatprep.subr.mxu1 %v1682_v0 }
 0xad0   :  { %1550 = vmatpush3.msra.mxu1 %v1743_v4 }
 0xad1   :  { %1551 = vmatprep.subr.mxu1 %v1682_v0 }
 0xad2   :  { %1552 = vmatpush3.msra.mxu1 %v1752_v5 }
 0xad3   :  { %1567 = vmatprep.subr.mxu1 %v1682_v0 }
 0xb8b   :  { %v632_v13 = vpop.f32.mrf.mxu1 }
 0xb8c   :  { %v654_v14 = vadd.f32 %v632_v13, %v1781_v7  ;;  %644 = vrot.lane.b32.xlu0 %v632_v13, %s1685_s2  ;;  %v636_v17 = vadd.f32 %v1417_v16, %v632_v13 }
 0xb8d   :  { %v1533_v15 = vpop.f32.mrf.mxu1 }
 0xb8e   :  { %656 = vrot.lane.b32.xlu1 %v654_v14, %s1684_s26  ;;  %v1420_v18 = vmul.f32 -1.442695, %v636_v17 }
 0xb90   :  { %1622 = vpow2.f32 %v1420_v18 }
 0xb92   :  { %666 = vrot.lane.b32.xlu1 %v654_v14, %s1686_s28 }
 0xb9d   :  { %v1623_v19 = vpop.eup %1622 }
 0xb9e   :  { %v640_v20 = vadd.f32 1.0, %v1623_v19 }
 0xba0   :  { %1624 = vrcp.f32 %v640_v20 }
 0xbad   :  { %v1625_v25 = vpop.eup %1624 }
 0xbfe   :  { %v645_v22 = vpop.permute.xlu0 %644 }
 0xbff   :  { %v647_v23 = vadd.f32 %v1418_v21, %v645_v22 }
 0xc00   :  { %v657_v26 = vpop.permute.xlu1 %656 }
 0xc01   :  { %v1421_v27 = vmul.f32 -1.442695, %v647_v23  ;;  %v659_v28 = vmul.f32 %v1625_v25, %v657_v26 }
 0xc03   :  { %1626 = vpow2.f32 %v1421_v27  ;;  %661 = vrot.lane.b32.xlu0 %v659_v28, %s1687_s8 }
 0xc04   :  { %v667_v32 = vpop.permute.xlu1 %666 }
 0xc10   :  { %v1627_v29 = vpop.eup %1626 }
 0xc11   :  { %v651_v30 = vadd.f32 1.0, %v1627_v29 }
 0xc13   :  { %1628 = vrcp.f32 %v651_v30 }
 0xc20   :  { %v1629_v31 = vpop.eup %1628 }
 0xc21   :  { %v669_v33 = vmul.f32 %v1629_v31, %v667_v32 }
 0xc23   :  { %671 = vrot.lane.b32.xlu1 %v669_v33, %s1687_s8 }
 0xc75   :  { %v662_v34 = vpop.permute.xlu0 %661 }
 0xc76   :  { %v664_v35 = vadd.f32 %v1417_v16, %v662_v34 }
 0xc78   :  { %1630 = vtanh.f32 %v664_v35 }
 0xc85   :  { %v1631_v36 = vpop.eup %1630 }
 0xc86   :  { %677 = vrot.lane.b32.xlu0 %v1631_v36, %s1685_s2 }
 0xc95   :  { %v672_v37 = vpop.permute.xlu1 %671 }
 0xc96   :  { %v674_v38 = vadd.f32 %v1418_v21, %v672_v37 }
 0xc98   :  { %1632 = vtanh.f32 %v674_v38 }
 0xca5   :  { %v1633_v39 = vpop.eup %1632 }
 0xca6   :  { %692 = vrot.lane.b32.xlu1 %v1633_v39, %s1688_s9 }
 0xcf8   :  { %v678_v40 = vpop.permute.xlu0 %677 }
 0xcf9   :  { %v680_v41 = vsub.f32 %v562_v12, %v678_v40 }
 0xcfb   :  { %682 = vrot.lane.b32.xlu0 %v680_v41, %s1689_s10 }
 0xd18   :  { %v693_v43 = vpop.permute.xlu1 %692 }
 0xd19   :  { %v695_v44 = vsub.f32 %v562_v12, %v693_v43 }
 0xd1b   :  { %v696_v45 = vmul.f32 %v1629_v31, %v695_v44 }
 0xd1d   :  { %698 = vrot.lane.b32.xlu0 %v696_v45, %s1689_s10 }
 0xd6d   :  { %v683_v46 = vpop.permute.xlu0 %682 }
 0xd6e   :  { %v685_v47 = vmul.f32 %v1625_v25, %v683_v46 }
 0xd70   :  { %687 = vrot.lane.b32.xlu1 %v685_v47, %s1689_s10 }
 0xd8f   :  { %v699_v48 = vpop.permute.xlu0 %698 }
 0xd90   :  { %v1919_v49 = vadd.f32 %v1633_v39, %v699_v48 }
 0xd92   :  { %708 = vrot.lane.b32.xlu0 %v1919_v49, %s1688_s9 }
 0xde2   :  { %v688_v50 = vpop.permute.xlu1 %687 }
 0xde3   :  { %v690_v51 = vadd.f32 %v1631_v36, %v688_v50 }
 0xde5   :  { %703 = vrot.lane.b32.xlu1 %v690_v51, %s1685_s2 }
 0xe04   :  { %v709_v53 = vpop.permute.xlu0 %708 }
 0xe57   :  { %v704_v52 = vpop.permute.xlu1 %703 }
 0xe58   :  { %706 = vst.msk [vmem:[#allocation2] sm:$0x3f] %vm222_vm3, %v704_v52  ;;  %1422 = vst.msk [vmem:[%s2108_s4 + $0x18] sm:$0x3f] %vm222_vm3, %v704_v52 }
 0xe59   :  { %711 = vst.msk [vmem:[#allocation2] sm:$0x3f] %vm228_vm4, %v709_v53 }
 0xe60   :  { %v723_v54 = vld [vmem:[#allocation2] sm:$0x3f] }
 0xe61   :  { %1543 = vmatmul.mubr.msk.f32.vlgmr.msra.gmra.mxu0 %vm75_vm2, %v723_v54 }
 0xe62   :  { %1557 = vmatpush3.msra.mxu0 %v1724_v1  ;;  %1564 = vmatprep.mubr.msk.f32.mxu0 %vm1683_vm1, %v1682_v0 }
 0xe63   :  { %1558 = vmatprep.subr.mxu0 %v1682_v0 }
 0xe64   :  { %1559 = vmatpush3.msra.mxu0 %v1729_v2 }
 0xe65   :  { %1560 = vmatprep.subr.mxu0 %v1682_v0 }
 0xe66   :  { %1561 = vmatpush3.msra.mxu0 %v1743_v4 }
 0xe67   :  { %1562 = vmatprep.subr.mxu0 %v1682_v0 }
 0xe68   :  { %1563 = vmatpush3.msra.mxu0 %v1752_v5 }
 0xf21   :  { %v793_v55 = vpop.f32.mrf.mxu0 }
 0xf22   :  { %v815_v56 = vadd.f32 %v793_v55, %v1781_v7  ;;  %805 = vrot.lane.b32.xlu0 %v793_v55, %s1685_s2  ;;  %v797_v59 = vadd.f32 %v1424_v58, %v793_v55 }
 0xf23   :  { %v1544_v57 = vpop.f32.mrf.mxu0 }
 0xf24   :  { %817 = vrot.lane.b32.xlu1 %v815_v56, %s1684_s26  ;;  %v1427_v60 = vmul.f32 -1.442695, %v797_v59 }
 0xf26   :  { %1634 = vpow2.f32 %v1427_v60 }
 0xf28   :  { %827 = vrot.lane.b32.xlu1 %v815_v56, %s1686_s28 }
 0xf33   :  { %v1635_v61 = vpop.eup %1634 }
 0xf34   :  { %v801_v62 = vadd.f32 1.0, %v1635_v61 }
 0xf36   :  { %1636 = vrcp.f32 %v801_v62 }
 0xf43   :  { %v1637_v9 = vpop.eup %1636 }
 0xf94   :  { %v806_v3 = vpop.permute.xlu0 %805 }
 0xf95   :  { %v808_v8 = vadd.f32 %v1425_v63, %v806_v3 }
 0xf96   :  { %v818_v10 = vpop.permute.xlu1 %817 }
 0xf97   :  { %v1428_v11 = vmul.f32 -1.442695, %v808_v8  ;;  %v820_v12 = vmul.f32 %v1637_v9, %v818_v10 }
 0xf99   :  { %1638 = vpow2.f32 %v1428_v11  ;;  %822 = vrot.lane.b32.xlu0 %v820_v12, %s1687_s8 }
 0xf9a   :  { %v828_v16 = vpop.permute.xlu1 %827 }
 0xfa6   :  { %v1639_v13 = vpop.eup %1638 }
 0xfa7   :  { %v812_v14 = vadd.f32 1.0, %v1639_v13 }
 0xfa9   :  { %1640 = vrcp.f32 %v812_v14 }
 0xfb6   :  { %v1641_v15 = vpop.eup %1640 }
 0xfb7   :  { %v830_v17 = vmul.f32 %v1641_v15, %v828_v16 }
 0xfb9   :  { %832 = vrot.lane.b32.xlu1 %v830_v17, %s1687_s8 }
0x100b   :  { %v823_v18 = vpop.permute.xlu0 %822 }
0x100c   :  { %v825_v19 = vadd.f32 %v1424_v58, %v823_v18 }
0x100e   :  { %1642 = vtanh.f32 %v825_v19 }
0x101b   :  { %v1643_v20 = vpop.eup %1642 }
0x101c   :  { %838 = vrot.lane.b32.xlu0 %v1643_v20, %s1685_s2 }
0x102b   :  { %v833_v21 = vpop.permute.xlu1 %832 }
0x102c   :  { %v835_v22 = vadd.f32 %v1425_v63, %v833_v21 }
0x102e   :  { %1644 = vtanh.f32 %v835_v22  ;;  %v1438_v22 = vld [vmem:[%s2106_s0 + $0x30] sm:$0x3f] }
0x103b   :  { %v1645_v23 = vpop.eup %1644 }
0x103c   :  { %853 = vrot.lane.b32.xlu1 %v1645_v23, %s1688_s9 }
0x108e   :  { %v839_v25 = vpop.permute.xlu0 %838 }
0x108f   :  { %v841_v26 = vsub.f32 %v723_v54, %v839_v25 }
0x1091   :  { %843 = vrot.lane.b32.xlu0 %v841_v26, %s1689_s10 }
0x10ae   :  { %v854_v27 = vpop.permute.xlu1 %853 }
0x10af   :  { %v856_v28 = vsub.f32 %v723_v54, %v854_v27 }
0x10b1   :  { %v857_v29 = vmul.f32 %v1641_v15, %v856_v28  ;;  %v1439_v28 = vld [vmem:[%s2107_s1 + $0x8] sm:$0x3f] }
0x10b3   :  { %859 = vrot.lane.b32.xlu0 %v857_v29, %s1689_s10 }
0x1103   :  { %v844_v30 = vpop.permute.xlu0 %843 }
0x1104   :  { %v846_v31 = vmul.f32 %v1637_v9, %v844_v30 }
0x1106   :  { %848 = vrot.lane.b32.xlu1 %v846_v31, %s1689_s10 }
0x1125   :  { %v860_v32 = vpop.permute.xlu0 %859 }
0x1126   :  { %v1957_v33 = vadd.f32 %v1645_v23, %v860_v32 }
0x1128   :  { %869 = vrot.lane.b32.xlu0 %v1957_v33, %s1688_s9 }
0x1178   :  { %v849_v34 = vpop.permute.xlu1 %848 }
0x1179   :  { %v851_v35 = vadd.f32 %v1643_v20, %v849_v34 }
0x117b   :  { %864 = vrot.lane.b32.xlu1 %v851_v35, %s1685_s2 }
0x119a   :  { %v870_v37 = vpop.permute.xlu0 %869 }
0x11ed   :  { %v865_v36 = vpop.permute.xlu1 %864 }
0x11ee   :  { %867 = vst.msk [vmem:[#allocation2] sm:$0x3f] %vm222_vm3, %v865_v36  ;;  %1429 = vst.msk [vmem:[%s2108_s4 + $0x20] sm:$0x3f] %vm222_vm3, %v865_v36 }
0x11ef   :  { %872 = vst.msk [vmem:[#allocation2] sm:$0x3f] %vm228_vm4, %v870_v37 }
0x11f6   :  { %v884_v38 = vld [vmem:[#allocation2] sm:$0x3f] }
0x11f7   :  { %1554 = vmatmul.mubr.msk.f32.vlgmr.msra.gmra.mxu1 %vm75_vm2, %v884_v38 }
0x11f8   :  { %1568 = vmatpush3.msra.mxu1 %v1724_v1  ;;  %1575 = vmatprep.mubr.msk.f32.mxu1 %vm1683_vm1, %v1682_v0 }
0x11f9   :  { %1569 = vmatprep.subr.mxu1 %v1682_v0 }
0x11fa   :  { %1570 = vmatpush3.msra.mxu1 %v1729_v2  ;;  %v1431_v2 = vld [vmem:[%s2106_s0 + $0x28] sm:$0x3f] }
0x11fb   :  { %1571 = vmatprep.subr.mxu1 %v1682_v0 }
0x11fc   :  { %1572 = vmatpush3.msra.mxu1 %v1743_v4 }
0x11fd   :  { %1573 = vmatprep.subr.mxu1 %v1682_v0 }
0x11fe   :  { %1574 = vmatpush3.msra.mxu1 %v1752_v5  ;;  %v1432_v5 = vld [vmem:[%s2107_s1 + $0x10] sm:$0x3f] }
0x12b7   :  { %v954_v39 = vpop.f32.mrf.mxu1 }
0x12b8   :  { %v976_v40 = vadd.f32 %v954_v39, %v1781_v7  ;;  %966 = vrot.lane.b32.xlu0 %v954_v39, %s1685_s2  ;;  %v958_v41 = vadd.f32 %v1431_v2, %v954_v39 }
0x12b9   :  { %v1555_v1 = vpop.f32.mrf.mxu1 }
0x12ba   :  { %978 = vrot.lane.b32.xlu1 %v976_v40, %s1684_s26  ;;  %v1434_v4 = vmul.f32 -1.442695, %v958_v41 }
0x12bc   :  { %1646 = vpow2.f32 %v1434_v4 }
0x12be   :  { %988 = vrot.lane.b32.xlu1 %v976_v40, %s1686_s28 }
0x12c9   :  { %v1647_v0 = vpop.eup %1646 }
0x12ca   :  { %v962_v43 = vadd.f32 1.0, %v1647_v0 }
0x12cc   :  { %1648 = vrcp.f32 %v962_v43 }
0x12d9   :  { %v1649_v46 = vpop.eup %1648 }
0x132a   :  { %v967_v44 = vpop.permute.xlu0 %966 }
0x132b   :  { %v969_v45 = vadd.f32 %v1432_v5, %v967_v44 }
0x132c   :  { %v979_v47 = vpop.permute.xlu1 %978 }
0x132d   :  { %v1435_v48 = vmul.f32 -1.442695, %v969_v45  ;;  %v981_v50 = vmul.f32 %v1649_v46, %v979_v47 }
0x132f   :  { %1650 = vpow2.f32 %v1435_v48  ;;  %983 = vrot.lane.b32.xlu0 %v981_v50, %s1687_s8 }
0x1330   :  { %v989_v54 = vpop.permute.xlu1 %988 }
0x133c   :  { %v1651_v51 = vpop.eup %1650 }
0x133d   :  { %v973_v52 = vadd.f32 1.0, %v1651_v51 }
0x133f   :  { %1652 = vrcp.f32 %v973_v52 }
0x134c   :  { %v1653_v53 = vpop.eup %1652 }
0x134d   :  { %v991_v55 = vmul.f32 %v1653_v53, %v989_v54 }
0x134f   :  { %993 = vrot.lane.b32.xlu1 %v991_v55, %s1687_s8 }
0x13a1   :  { %v984_v56 = vpop.permute.xlu0 %983 }
0x13a2   :  { %v986_v57 = vadd.f32 %v1431_v2, %v984_v56 }
0x13a4   :  { %1654 = vtanh.f32 %v986_v57 }
0x13b1   :  { %v1655_v58 = vpop.eup %1654 }
0x13b2   :  { %999 = vrot.lane.b32.xlu0 %v1655_v58, %s1685_s2 }
0x13c1   :  { %v994_v59 = vpop.permute.xlu1 %993 }
0x13c2   :  { %v996_v60 = vadd.f32 %v1432_v5, %v994_v59 }
0x13c4   :  { %1656 = vtanh.f32 %v996_v60 }
0x13d1   :  { %v1657_v61 = vpop.eup %1656 }
0x13d2   :  { %1014 = vrot.lane.b32.xlu1 %v1657_v61, %s1688_s9 }
0x1424   :  { %v1000_v62 = vpop.permute.xlu0 %999 }
0x1425   :  { %v1002_v63 = vsub.f32 %v884_v38, %v1000_v62 }
0x1427   :  { %1004 = vrot.lane.b32.xlu0 %v1002_v63, %s1689_s10 }
0x1444   :  { %v1015_v3 = vpop.permute.xlu1 %1014 }
0x1445   :  { %v1017_v8 = vsub.f32 %v884_v38, %v1015_v3 }
0x1447   :  { %v1018_v9 = vmul.f32 %v1653_v53, %v1017_v8 }
0x1449   :  { %1020 = vrot.lane.b32.xlu0 %v1018_v9, %s1689_s10 }
0x1499   :  { %v1005_v10 = vpop.permute.xlu0 %1004 }
0x149a   :  { %v1007_v11 = vmul.f32 %v1649_v46, %v1005_v10 }
0x149c   :  { %1009 = vrot.lane.b32.xlu1 %v1007_v11, %s1689_s10 }
0x14bb   :  { %v1021_v12 = vpop.permute.xlu0 %1020 }
0x14bc   :  { %v1995_v13 = vadd.f32 %v1657_v61, %v1021_v12  ;;  %v1445_v61 = vld [vmem:[%s2106_s0 + $0x38] sm:$0x3f] }
0x14be   :  { %1030 = vrot.lane.b32.xlu0 %v1995_v13, %s1688_s9 }
0x150e   :  { %v1010_v14 = vpop.permute.xlu1 %1009 }
0x150f   :  { %v1012_v15 = vadd.f32 %v1655_v58, %v1010_v14 }
0x1511   :  { %1025 = vrot.lane.b32.xlu1 %v1012_v15, %s1685_s2 }
0x1530   :  { %v1031_v17 = vpop.permute.xlu0 %1030 }
0x1583   :  { %v1026_v16 = vpop.permute.xlu1 %1025 }
0x1584   :  { %1028 = vst.msk [vmem:[#allocation2] sm:$0x3f] %vm222_vm3, %v1026_v16  ;;  %1436 = vst.msk [vmem:[%s2108_s4 + $0x28] sm:$0x3f] %vm222_vm3, %v1026_v16 }
0x1585   :  { %1033 = vst.msk [vmem:[#allocation2] sm:$0x3f] %vm228_vm4, %v1031_v17 }
0x158c   :  { %v1045_v18 = vld [vmem:[#allocation2] sm:$0x3f] }
0x158d   :  { %1565 = vmatmul.mubr.msk.f32.vlgmr.msra.gmra.mxu0 %vm75_vm2, %v1045_v18 }
0x164d   :  { %v1115_v19 = vpop.f32.mrf.mxu0 }
0x164e   :  { %v1137_v20 = vadd.f32 %v1115_v19, %v1781_v7  ;;  %1127 = vrot.lane.b32.xlu0 %v1115_v19, %s1685_s2  ;;  %v1119_v23 = vadd.f32 %v1438_v22, %v1115_v19 }
0x164f   :  { %v1566_v21 = vpop.f32.mrf.mxu0 }
0x1650   :  { %1139 = vrot.lane.b32.xlu1 %v1137_v20, %s1684_s26  ;;  %v1441_v25 = vmul.f32 -1.442695, %v1119_v23 }
0x1652   :  { %1658 = vpow2.f32 %v1441_v25 }
0x1654   :  { %1149 = vrot.lane.b32.xlu1 %v1137_v20, %s1686_s28 }
0x165f   :  { %v1659_v26 = vpop.eup %1658 }
0x1660   :  { %v1123_v27 = vadd.f32 1.0, %v1659_v26 }
0x1662   :  { %1660 = vrcp.f32 %v1123_v27 }
0x166f   :  { %v1661_v31 = vpop.eup %1660 }
0x16c0   :  { %v1128_v29 = vpop.permute.xlu0 %1127 }
0x16c1   :  { %v1130_v30 = vadd.f32 %v1439_v28, %v1128_v29 }
0x16c2   :  { %v1140_v32 = vpop.permute.xlu1 %1139 }
0x16c3   :  { %v1442_v34 = vmul.f32 -1.442695, %v1130_v30  ;;  %v1142_v35 = vmul.f32 %v1661_v31, %v1140_v32 }
0x16c5   :  { %1662 = vpow2.f32 %v1442_v34  ;;  %1144 = vrot.lane.b32.xlu0 %v1142_v35, %s1687_s8 }
0x16c6   :  { %v1150_v39 = vpop.permute.xlu1 %1149 }
0x16d2   :  { %v1663_v36 = vpop.eup %1662 }
0x16d3   :  { %v1134_v37 = vadd.f32 1.0, %v1663_v36 }
0x16d5   :  { %1664 = vrcp.f32 %v1134_v37 }
0x16e2   :  { %v1665_v38 = vpop.eup %1664 }
0x16e3   :  { %v1152_v40 = vmul.f32 %v1665_v38, %v1150_v39 }
0x16e5   :  { %1154 = vrot.lane.b32.xlu1 %v1152_v40, %s1687_s8 }
0x1737   :  { %v1145_v1 = vpop.permute.xlu0 %1144 }
0x1738   :  { %v1147_v2 = vadd.f32 %v1438_v22, %v1145_v1 }
0x173a   :  { %1666 = vtanh.f32 %v1147_v2 }
0x1747   :  { %v1667_v41 = vpop.eup %1666 }
0x1748   :  { %1160 = vrot.lane.b32.xlu0 %v1667_v41, %s1685_s2 }
0x1757   :  { %v1155_v4 = vpop.permute.xlu1 %1154 }
0x1758   :  { %v1157_v0 = vadd.f32 %v1439_v28, %v1155_v4 }
0x175a   :  { %1668 = vtanh.f32 %v1157_v0 }
0x1767   :  { %v1669_v43 = vpop.eup %1668 }
0x1768   :  { %1175 = vrot.lane.b32.xlu1 %v1669_v43, %s1688_s9 }
0x17ba   :  { %v1161_v5 = vpop.permute.xlu0 %1160 }
0x17bb   :  { %v1163_v44 = vsub.f32 %v1045_v18, %v1161_v5 }
0x17bd   :  { %1165 = vrot.lane.b32.xlu0 %v1163_v44, %s1689_s10 }
0x17da   :  { %v1176_v45 = vpop.permute.xlu1 %1175 }
0x17db   :  { %v1178_v46 = vsub.f32 %v1045_v18, %v1176_v45 }
0x17dd   :  { %v1179_v47 = vmul.f32 %v1665_v38, %v1178_v46 }
0x17df   :  { %1181 = vrot.lane.b32.xlu0 %v1179_v47, %s1689_s10 }
0x182f   :  { %v1166_v48 = vpop.permute.xlu0 %1165 }
0x1830   :  { %v1168_v50 = vmul.f32 %v1661_v31, %v1166_v48 }
0x1832   :  { %1170 = vrot.lane.b32.xlu1 %v1168_v50, %s1689_s10 }
0x1851   :  { %v1182_v51 = vpop.permute.xlu0 %1181 }
0x1852   :  { %v1184_v52 = vadd.f32 %v1669_v43, %v1182_v51 }
0x1854   :  { %1191 = vrot.lane.b32.xlu0 %v1184_v52, %s1688_s9 }
0x18a4   :  { %v1171_v53 = vpop.permute.xlu1 %1170 }
0x18a5   :  { %v1173_v54 = vadd.f32 %v1667_v41, %v1171_v53 }
0x18a7   :  { %1186 = vrot.lane.b32.xlu1 %v1173_v54, %s1685_s2 }
0x18c6   :  { %v1192_v56 = vpop.permute.xlu0 %1191 }
0x1919   :  { %v1187_v55 = vpop.permute.xlu1 %1186 }
0x191a   :  { %1189 = vst.msk [vmem:[#allocation2] sm:$0x3f] %vm222_vm3, %v1187_v55  ;;  %1443 = vst.msk [vmem:[%s2108_s4 + $0x30] sm:$0x3f] %vm222_vm3, %v1187_v55 }
0x191b   :  { %1194 = vst.msk [vmem:[#allocation2] sm:$0x3f] %vm228_vm4, %v1192_v56 }
0x1922   :  { %v1205_v57 = vld [vmem:[#allocation2] sm:$0x3f] }
0x1923   :  { %1576 = vmatmul.mubr.msk.f32.vlgmr.msra.gmra.mxu1 %vm75_vm2, %v1205_v57 }
0x19e3   :  { %v1275_v58 = vpop.f32.mrf.mxu1 }
0x19e4   :  { %v1297_v59 = vadd.f32 %v1275_v58, %v1781_v7  ;;  %1287 = vrot.lane.b32.xlu0 %v1275_v58, %s1685_s2  ;;  %v1279_v62 = vadd.f32 %v1445_v61, %v1275_v58  ;;  %v1204_v7 = vld [vmem:[%s2107_s1] sm:$0x3f] }
0x19e5   :  { %v1577_v60 = vpop.f32.mrf.mxu1 }
0x19e6   :  { %1299 = vrot.lane.b32.xlu1 %v1297_v59, %s1684_s26  ;;  %v1447_v63 = vmul.f32 -1.442695, %v1279_v62 }
0x19e8   :  { %1670 = vpow2.f32 %v1447_v63 }
0x19ea   :  { %1309 = vrot.lane.b32.xlu1 %v1297_v59, %s1686_s28 }
0x19f5   :  { %v1671_v3 = vpop.eup %1670 }
0x19f6   :  { %v1283_v8 = vadd.f32 1.0, %v1671_v3 }
0x19f8   :  { %1672 = vrcp.f32 %v1283_v8 }
0x1a05   :  { %v1673_v11 = vpop.eup %1672 }
0x1a56   :  { %v1288_v9 = vpop.permute.xlu0 %1287 }
0x1a57   :  { %v1290_v10 = vadd.f32 %v1288_v9, %v1204_v7 }
0x1a58   :  { %v1300_v12 = vpop.permute.xlu1 %1299 }
0x1a59   :  { %v1448_v14 = vmul.f32 -1.442695, %v1290_v10  ;;  %v1302_v15 = vmul.f32 %v1673_v11, %v1300_v12 }
0x1a5b   :  { %1674 = vpow2.f32 %v1448_v14  ;;  %1304 = vrot.lane.b32.xlu0 %v1302_v15, %s1687_s8 }
0x1a5c   :  { %v1310_v19 = vpop.permute.xlu1 %1309 }
0x1a68   :  { %v1675_v16 = vpop.eup %1674 }
0x1a69   :  { %v1294_v17 = vadd.f32 1.0, %v1675_v16 }
0x1a6b   :  { %1676 = vrcp.f32 %v1294_v17 }
0x1a78   :  { %v1677_v18 = vpop.eup %1676 }
0x1a79   :  { %v1312_v20 = vmul.f32 %v1677_v18, %v1310_v19 }
0x1a7b   :  { %1314 = vrot.lane.b32.xlu1 %v1312_v20, %s1687_s8 }
0x1acd   :  { %v1305_v21 = vpop.permute.xlu0 %1304 }
0x1ace   :  { %v1307_v22 = vadd.f32 %v1445_v61, %v1305_v21 }
0x1ad0   :  { %1678 = vtanh.f32 %v1307_v22 }
0x1add   :  { %v1679_v23 = vpop.eup %1678 }
0x1ade   :  { %1320 = vrot.lane.b32.xlu0 %v1679_v23, %s1685_s2 }
0x1aed   :  { %v1315_v25 = vpop.permute.xlu1 %1314 }
0x1aee   :  { %v1317_v26 = vadd.f32 %v1315_v25, %v1204_v7 }
0x1af0   :  { %1680 = vtanh.f32 %v1317_v26 }
0x1afd   :  { %v1681_v27 = vpop.eup %1680 }
0x1afe   :  { %1335 = vrot.lane.b32.xlu1 %v1681_v27, %s1688_s9 }
0x1b50   :  { %v1321_v28 = vpop.permute.xlu0 %1320 }
0x1b51   :  { %v1323_v29 = vsub.f32 %v1205_v57, %v1321_v28 }
0x1b53   :  { %1325 = vrot.lane.b32.xlu0 %v1323_v29, %s1689_s10 }
0x1b70   :  { %v1336_v30 = vpop.permute.xlu1 %1335 }
0x1b71   :  { %v1338_v31 = vsub.f32 %v1205_v57, %v1336_v30 }
0x1b73   :  { %v1339_v32 = vmul.f32 %v1677_v18, %v1338_v31 }
0x1b75   :  { %1341 = vrot.lane.b32.xlu0 %v1339_v32, %s1689_s10 }
0x1b79   :  { %231 = vrot.lane.b32.xlu0 %v1802_v42, %s1685_s2 }
0x1b7d   :  { %553 = vrot.lane.b32.xlu0 %v1880_v6, %s1685_s2 }
0x1b81   :  { %875 = vrot.lane.b32.xlu0 %v1957_v33, %s1685_s2 }
0x1b85   :  { %1197 = vrot.lane.b32.xlu0 %v1184_v52, %s1685_s2 }
0x1bc5   :  { %v1326_v34 = vpop.permute.xlu0 %1325 }
0x1bc6   :  { %v1328_v35 = vmul.f32 %v1673_v11, %v1326_v34 }
0x1bc8   :  { %1330 = vrot.lane.b32.xlu1 %v1328_v35, %s1689_s10 }
0x1bcc   :  { %392 = vrot.lane.b32.xlu1 %v1841_v24, %s1685_s2 }
0x1bd0   :  { %714 = vrot.lane.b32.xlu1 %v1919_v49, %s1685_s2 }
0x1bd4   :  { %1036 = vrot.lane.b32.xlu1 %v1995_v13, %s1685_s2 }
0x1be7   :  { %v1342_v42 = vpop.permute.xlu0 %1341 }
0x1be8   :  { %v1344_v6 = vadd.f32 %v1681_v27, %v1342_v42 }
0x1bea   :  { %1357 = vrot.lane.b32.xlu0 %v1344_v6, %s1685_s2 }
0x1beb   :  { %v232_v33 = vpop.permute.xlu0 %231 }
0x1bec   :  { %1402 = vst.msk [vmem:[%s2109_s5 + $0x38] sm:$0x3f] %vm222_vm3, %v232_v33 }
0x1bef   :  { %v554_v36 = vpop.permute.xlu0 %553 }
0x1bf0   :  { %1416 = vst.msk [vmem:[%s2109_s5 + $0x28] sm:$0x3f] %vm222_vm3, %v554_v36 }
0x1bf3   :  { %v876_v24 = vpop.permute.xlu0 %875 }
0x1bf4   :  { %1430 = vst.msk [vmem:[%s2109_s5 + $0x18] sm:$0x3f] %vm222_vm3, %v876_v24 }
0x1bf7   :  { %v1198_v49 = vpop.permute.xlu0 %1197 }
0x1bf8   :  { %1444 = vst.msk [vmem:[%s2109_s5 + $0x8] sm:$0x3f] %vm222_vm3, %v1198_v49 }
0x1c3a   :  { %v1331_v13 = vpop.permute.xlu1 %1330 }
0x1c3b   :  { %v1333_v37 = vadd.f32 %v1679_v23, %v1331_v13 }
0x1c3d   :  { %1346 = vrot.lane.b32.xlu1 %v1333_v37, %s1685_s2 }
0x1c3e   :  { %v393_v38 = vpop.permute.xlu1 %392 }
0x1c3f   :  { %1409 = vst.msk [vmem:[%s2109_s5 + $0x30] sm:$0x3f] %vm222_vm3, %v393_v38 }
0x1c41   :  { %1351 = vrot.lane.b32.xlu1 %v1344_v6, %s1688_s9 }
0x1c42   :  { %v715_v39 = vpop.permute.xlu1 %714 }
0x1c43   :  { %1423 = vst.msk [vmem:[%s2109_s5 + $0x20] sm:$0x3f] %vm222_vm3, %v715_v39 }
0x1c46   :  { %v1037_v40 = vpop.permute.xlu1 %1036 }
0x1c47   :  { %1437 = vst.msk [vmem:[%s2109_s5 + $0x10] sm:$0x3f] %vm222_vm3, %v1037_v40 }
0x1c5c   :  { %v1358_v1 = vpop.permute.xlu0 %1357 }
0x1c5d   :  { %1360 = vst.msk [vmem:[%s2109_s5] sm:$0x3f] %vm222_vm3, %v1358_v1 }
0x1caf   :  { %v1347_v2 = vpop.permute.xlu1 %1346 }
0x1cb0   :  { %1349 = vst.msk [vmem:[#allocation2] sm:$0x3f] %vm222_vm3, %v1347_v2  ;;  %1449 = vst.msk [vmem:[%s2108_s4 + $0x38] sm:$0x3f] %vm222_vm3, %v1347_v2 }
0x1cb3   :  { %v1352_v41 = vpop.permute.xlu1 %1351 }
0x1cb4   :  { %1354 = vst.msk [vmem:[#allocation2] sm:$0x3f] %vm228_vm4, %v1352_v41 }

</bundles_post_ra>
